<compile_context>
chip_gen: v7x
topology: tpu7x:2x2x1
jax: 0.10.0
libtpu: 0.0.40
codegen_flags: <defaults>
</compile_context>

<pallas_src>
import functools

import jax
import jax.numpy as jnp
from jax import lax
from jax.experimental import pallas as pl
from jax.experimental.pallas import tpu as pltpu

# ---- hyperparameters implied by the module (lib.* / len(ws) chosen small) ----
VOCAB = 50          # len(ws)
EMB_DIM = 100       # nn.Embedding(len(ws), 100)
HIDDEN = 32         # lib.hidden_size
NUM_LAYERS = 2      # lib.num_layers
# lib.bidirectional = True, lib.drop_out only active in training -> ignored at eval


# ----------------------------- Pallas kernel ----------------------------------
def bilstm_fused_kernel(x_ref,
                        wih0_ref, whh0_ref, b0_ref,
                        wih1_ref, whh1_ref, b1_ref,
                        fcw_ref, fcb_ref,
                        out_ref,
                        pfw_sc, pbw_sc, yfw_sc, ybw_sc,
                        *, seq_len, batch, hidden):
    """Whole model (2-layer BiLSTM + FC + log_softmax) in one kernel.

    x_ref:   (T*B, E)  time-major flattened embedded input
    wihL:    (D_in, 8H)  = [W_ih_fw | W_ih_bw] along the output axis
    whhL:    (2H, 4H)    = [W_hh_fw ; W_hh_bw] stacked along the input axis
    bL:      (2B, 4H)    pre-broadcast per-direction bias (rows 0..B-1 fwd, B..2B-1 bwd)
    fcw:     (2H, 2), fcb: (1, 2)
    out_ref: (B, 2) log-probabilities
    scratch: pfw/pbw (T*B, 4H) hoisted input projections, yfw/ybw (T*B, H) layer-0 seq out
    """
    T, B, H = seq_len, batch, hidden
    H4 = 4 * H

    # Direction mask, built once: rows [0,B) keep the forward state in cols [0,H),
    # rows [B,2B) keep the backward state in cols [H,2H).  Used so a single
    # (2B,2H)x(2H,4H) matmul applies the correct per-direction W_hh.
    row = lax.broadcasted_iota(jnp.int32, (2 * B, 2 * H), 0)
    col = lax.broadcasted_iota(jnp.int32, (2 * B, 2 * H), 1)
    dir_mask = ((row < B) == (col < H)).astype(jnp.float32)

    def bilstm_layer(x_flat, wih, whh, bias2b, write_seq):
        # Hoisted input projection: all timesteps, both directions, one MXU matmul.
        proj = jnp.dot(x_flat, wih, preferred_element_type=jnp.float32)   # (T*B, 8H)
        pfw_sc[...] = proj[:, :H4]
        pbw_sc[...] = proj[:, H4:]

        def step(s, carry):
            h, c = carry                                     # (2B, H) each
            rs = T - 1 - s                                   # reversed time index
            xg = jnp.concatenate(
                [pfw_sc[pl.ds(s * B, B), :],                 # fwd consumes t = s
                 pbw_sc[pl.ds(rs * B, B), :]], axis=0)       # bwd consumes t = T-1-s
            h2 = jnp.concatenate([h, h], axis=-1) * dir_mask  # (2B, 2H), block-padded
            gates = (xg
                     + jnp.dot(h2, whh, preferred_element_type=jnp.float32)
                     + bias2b)                                # (2B, 4H) = one vreg
            # full-vreg EUP pushes, then cheap lane slices (PyTorch gate order i,f,g,o)
            sig = jax.nn.sigmoid(gates)
            tan = jnp.tanh(gates)
            i = sig[:, 0 * H:1 * H]
            f = sig[:, 1 * H:2 * H]
            g = tan[:, 2 * H:3 * H]
            o = sig[:, 3 * H:4 * H]
            c_new = f * c + i * g
            h_new = o * jnp.tanh(c_new)
            if write_seq:
                yfw_sc[pl.ds(s * B, B), :] = h_new[:B]
                ybw_sc[pl.ds(rs * B, B), :] = h_new[B:]
            return h_new, c_new

        h0 = jnp.zeros((2 * B, H), jnp.float32)
        c0 = jnp.zeros((2 * B, H), jnp.float32)
        h_fin, _ = lax.fori_loop(0, T, step, (h0, c0), unroll=True)
        return h_fin

    # ---- layer 0 (its final hidden is not used by the head) ----
    bilstm_layer(x_ref[...], wih0_ref[...], whh0_ref[...], b0_ref[...],
                 write_seq=True)

    # ---- layer 1: input is layer-0 sequence output [y_fw | y_bw] ----
    x1 = jnp.concatenate([yfw_sc[...], ybw_sc[...]], axis=-1)     # (T*B, 2H)
    h_l1 = bilstm_layer(x1, wih1_ref[...], whh1_ref[...], b1_ref[...],
                        write_seq=False)

    # ---- FC + log_softmax head ----
    # h_n[-2] == last-layer forward final hidden (t = T-1), h_n[-1] == backward (t = 0);
    # both are exactly the stacked carry after the last loop step.
    feat = jnp.concatenate([h_l1[:B], h_l1[B:]], axis=-1)          # (B, 2H)
    logits = (jnp.dot(feat, fcw_ref[...], preferred_element_type=jnp.float32)
              + fcb_ref[...])
    m = jnp.max(logits, axis=-1, keepdims=True)
    lse = jnp.log(jnp.sum(jnp.exp(logits - m), axis=-1, keepdims=True)) + m
    out_ref[...] = logits - lse


# ----------------------------- wrappers ---------------------------------------
def _pack_layer(dir_params, batch):
    """Pack per-direction PyTorch-style weights into the fused layout."""
    (wf_ih, wf_hh, bf), (wb_ih, wb_hh, bb) = dir_params
    wih = jnp.concatenate([wf_ih, wb_ih], axis=1)                  # (D_in, 8H)
    whh = jnp.concatenate([wf_hh, wb_hh], axis=0)                  # (2H, 4H)
    bias = jnp.concatenate(
        [jnp.broadcast_to(bf, (batch, 4 * HIDDEN)),
         jnp.broadcast_to(bb, (batch, 4 * HIDDEN))], axis=0)       # (2B, 4H)
    return wih, whh, bias


def forward(params, token_ids):
    """token_ids: (B, T) int32 -> (B, 2) log-probabilities."""
    B, T = token_ids.shape
    # Embedding lookup is plain glue (tiny gather), kept outside the kernel.
    x = jnp.take(params["emb"], token_ids, axis=0)                 # (B, T, E)
    x = jnp.transpose(x, (1, 0, 2)).reshape(T * B, EMB_DIM)        # time-major (T*B, E)
    x = x.astype(jnp.float32)

    wih0, whh0, b0 = _pack_layer(params["lstm"][0], B)
    wih1, whh1, b1 = _pack_layer(params["lstm"][1], B)

    kernel = functools.partial(bilstm_fused_kernel,
                               seq_len=T, batch=B, hidden=HIDDEN)
    return pl.pallas_call(
        kernel,
        out_shape=jax.ShapeDtypeStruct((B, 2), jnp.float32),
        in_specs=[pl.BlockSpec(memory_space=pltpu.MemorySpace.VMEM)] * 9,
        out_specs=pl.BlockSpec(memory_space=pltpu.MemorySpace.VMEM),
        scratch_shapes=[
            pltpu.VMEM((T * B, 4 * HIDDEN), jnp.float32),   # fwd input projections
            pltpu.VMEM((T * B, 4 * HIDDEN), jnp.float32),   # bwd input projections
            pltpu.VMEM((T * B, HIDDEN), jnp.float32),       # layer-0 fwd sequence out
            pltpu.VMEM((T * B, HIDDEN), jnp.float32),       # layer-0 bwd sequence out
        ],
    )(x, wih0, whh0, b0, wih1, whh1, b1, params["fc_w"], params["fc_b"])


def init_params(key):
    params = {}
    key, k_emb = jax.random.split(key)
    params["emb"] = 0.1 * jax.random.normal(k_emb, (VOCAB, EMB_DIM), jnp.float32)

    lstm = []
    in_dim = EMB_DIM
    for _layer in range(NUM_LAYERS):
        dirs = []
        for _d in range(2):  # forward, backward
            key, k1, k2, k3, k4 = jax.random.split(key, 5)
            w_ih = 0.1 * jax.random.normal(k1, (in_dim, 4 * HIDDEN), jnp.float32)
            w_hh = 0.1 * jax.random.normal(k2, (HIDDEN, 4 * HIDDEN), jnp.float32)
            # b_ih + b_hh combined into a single broadcastable bias row
            b = 0.1 * (jax.random.normal(k3, (1, 4 * HIDDEN), jnp.float32)
                       + jax.random.normal(k4, (1, 4 * HIDDEN), jnp.float32))
            dirs.append((w_ih, w_hh, b))
        lstm.append(dirs)
        in_dim = 2 * HIDDEN
    params["lstm"] = lstm

    key, kw, kb = jax.random.split(key, 3)
    params["fc_w"] = 0.1 * jax.random.normal(kw, (2 * HIDDEN, 2), jnp.float32)
    params["fc_b"] = 0.1 * jax.random.normal(kb, (1, 2), jnp.float32)
    return params


# ----------------------------- pure-JAX reference -----------------------------
def _ref_lstm_dir(x_tbd, w_ih, w_hh, b):
    def step(carry, x_t):
        h, c = carry
        gates = x_t @ w_ih + h @ w_hh + b[0]
        i = jax.nn.sigmoid(gates[:, 0 * HIDDEN:1 * HIDDEN])
        f = jax.nn.sigmoid(gates[:, 1 * HIDDEN:2 * HIDDEN])
        g = jnp.tanh(gates[:, 2 * HIDDEN:3 * HIDDEN])
        o = jax.nn.sigmoid(gates[:, 3 * HIDDEN:4 * HIDDEN])
        c = f * c + i * g
        h = o * jnp.tanh(c)
        return (h, c), h

    B = x_tbd.shape[1]
    h0 = jnp.zeros((B, HIDDEN), jnp.float32)
    (h_n, _), ys = jax.lax.scan(step, (h0, h0), x_tbd)
    return ys, h_n


def forward_ref(params, token_ids):
    x = jnp.take(params["emb"], token_ids, axis=0)
    x = jnp.transpose(x, (1, 0, 2))
    h_fw = h_bw = None
    for (fw_w, bw_w) in params["lstm"]:
        y_fw, h_fw = _ref_lstm_dir(x, *fw_w)
        y_bw_rev, h_bw = _ref_lstm_dir(x[::-1], *bw_w)
        x = jnp.concatenate([y_fw, y_bw_rev[::-1]], axis=-1)
    feat = jnp.concatenate([h_fw, h_bw], axis=-1)
    logits = feat @ params["fc_w"] + params["fc_b"]
    return jax.nn.log_softmax(logits, axis=-1)


# ----------------------------- main -------------------------------------------
if __name__ == "__main__":
    key = jax.random.PRNGKey(0)
    key, k_params, k_ids = jax.random.split(key, 3)

    params = init_params(k_params)

    B, T = 4, 8
    token_ids = jax.random.randint(k_ids, (B, T), 0, VOCAB, dtype=jnp.int32)

    out = jax.jit(forward)(params, token_ids)
    out = jax.block_until_ready(out)

    ref = forward_ref(params, token_ids)
    assert out.shape == (B, 2)
    assert jnp.allclose(out, ref, atol=2e-3, rtol=2e-3), "mismatch vs JAX reference"

    print("KERNEL_OK")
</pallas_src>

<mosaic_0001>
module attributes {stable_mosaic.version = 11 : i64} {
  func.func @bilstm_fused_kernel(%arg0: memref<32x100xf32, #tpu.memory_space<vmem>>, %arg1: memref<100x256xf32, #tpu.memory_space<vmem>>, %arg2: memref<64x128xf32, #tpu.memory_space<vmem>>, %arg3: memref<8x128xf32, #tpu.memory_space<vmem>>, %arg4: memref<64x256xf32, #tpu.memory_space<vmem>>, %arg5: memref<64x128xf32, #tpu.memory_space<vmem>>, %arg6: memref<8x128xf32, #tpu.memory_space<vmem>>, %arg7: memref<64x2xf32, #tpu.memory_space<vmem>>, %arg8: memref<1x2xf32, #tpu.memory_space<vmem>>, %arg9: memref<4x2xf32, #tpu.memory_space<vmem>>, %arg10: memref<32x128xf32, #tpu.memory_space<vmem>>, %arg11: memref<32x128xf32, #tpu.memory_space<vmem>>, %arg12: memref<32x32xf32, #tpu.memory_space<vmem>>, %arg13: memref<32x32xf32, #tpu.memory_space<vmem>>) attributes {dimension_semantics = [], scalar_prefetch = 0 : i64, scratch_operands = 4 : i64, tpu.core_type = #tpu.core_type<tc>} {
    %0 = tpu.iota {dimensions = array<i32: 0>} : vector<8x64xi32>
    %1 = tpu.iota {dimensions = array<i32: 1>} : vector<8x64xi32>
    %c4_i32 = arith.constant 4 : i32
    %2 = vector.broadcast %c4_i32 : i32 to vector<8x64xi32>
    %3 = arith.cmpi slt, %0, %2 : vector<8x64xi32>
    %c32_i32 = arith.constant 32 : i32
    %4 = vector.broadcast %c32_i32 : i32 to vector<8x64xi32>
    %5 = arith.cmpi slt, %1, %4 : vector<8x64xi32>
    %6 = arith.xori %3, %5 : vector<8x64xi1>
    %cst = arith.constant dense<true> : vector<8x64xi1>
    %7 = arith.xori %6, %cst : vector<8x64xi1>
    %8 = arith.extui %7 : vector<8x64xi1> to vector<8x64xi32>
    %9 = arith.sitofp %8 : vector<8x64xi32> to vector<8x64xf32>
    %c0 = arith.constant 0 : index
    %c0_0 = arith.constant 0 : index
    %10 = vector.load %arg0[%c0, %c0_0] : memref<32x100xf32, #tpu.memory_space<vmem>>, vector<32x100xf32>
    %c0_1 = arith.constant 0 : index
    %c0_2 = arith.constant 0 : index
    %11 = vector.load %arg1[%c0_1, %c0_2] : memref<100x256xf32, #tpu.memory_space<vmem>>, vector<100x256xf32>
    %c0_3 = arith.constant 0 : index
    %c0_4 = arith.constant 0 : index
    %12 = vector.load %arg2[%c0_3, %c0_4] : memref<64x128xf32, #tpu.memory_space<vmem>>, vector<64x128xf32>
    %c0_5 = arith.constant 0 : index
    %c0_6 = arith.constant 0 : index
    %13 = vector.load %arg3[%c0_5, %c0_6] : memref<8x128xf32, #tpu.memory_space<vmem>>, vector<8x128xf32>
    %cst_7 = arith.constant dense<0.000000e+00> : vector<32x256xf32>
    %14 = tpu.matmul %10, %11, %cst_7 {dimension_numbers = #tpu.dot_dimension_numbers<[1], [0], [0], [1], [0, 0, 1, 1], [], []>} : vector<32x100xf32>, vector<100x256xf32>, vector<32x256xf32> -> vector<32x256xf32>
    %15 = vector.extract_strided_slice %14 {offsets = [0, 0], sizes = [32, 128], strides = [1, 1]} : vector<32x256xf32> to vector<32x128xf32>
    %c0_8 = arith.constant 0 : index
    %c0_9 = arith.constant 0 : index
    %16 = vector.load %arg10[%c0_8, %c0_9] : memref<32x128xf32, #tpu.memory_space<vmem>>, vector<32x128xf32>
    tpu.vector_store %arg10[%c0_8, %c0_9], %15 {strides = array<i32>} : memref<32x128xf32, #tpu.memory_space<vmem>>, vector<32x128xf32>,
    %17 = vector.extract_strided_slice %14 {offsets = [0, 128], sizes = [32, 128], strides = [1, 1]} : vector<32x256xf32> to vector<32x128xf32>
    %c0_10 = arith.constant 0 : index
    %c0_11 = arith.constant 0 : index
    %18 = vector.load %arg11[%c0_10, %c0_11] : memref<32x128xf32, #tpu.memory_space<vmem>>, vector<32x128xf32>
    tpu.vector_store %arg11[%c0_10, %c0_11], %17 {strides = array<i32>} : memref<32x128xf32, #tpu.memory_space<vmem>>, vector<32x128xf32>,
    %cst_12 = arith.constant 0.000000e+00 : f32
    %19 = vector.broadcast %cst_12 : f32 to vector<8x32xf32>
    %cst_13 = arith.constant 0.000000e+00 : f32
    %20 = vector.broadcast %cst_13 : f32 to vector<8x32xf32>
    %c0_i32 = arith.constant 0 : i32
    %c7_i32 = arith.constant 7 : i32
    %21 = arith.subi %c7_i32, %c0_i32 : i32
    %c4_i32_14 = arith.constant 4 : i32
    %22 = arith.muli %c0_i32, %c4_i32_14 : i32
    %23 = arith.index_cast %22 : i32 to index
    %c0_15 = arith.constant 0 : index
    %24 = vector.load %arg10[%23, %c0_15] : memref<32x128xf32, #tpu.memory_space<vmem>>, vector<4x128xf32>
    %c4_i32_16 = arith.constant 4 : i32
    %25 = arith.muli %21, %c4_i32_16 : i32
    %26 = arith.index_cast %25 : i32 to index
    %c0_17 = arith.constant 0 : index
    %27 = vector.load %arg11[%26, %c0_17] : memref<32x128xf32, #tpu.memory_space<vmem>>, vector<4x128xf32>
    %28 = tpu.concatenate %24, %27 in 0 : vector<4x128xf32>, vector<4x128xf32> -> vector<8x128xf32>
    %29 = tpu.concatenate %19, %19 in 1 : vector<8x32xf32>, vector<8x32xf32> -> vector<8x64xf32>
    %30 = arith.mulf %29, %9 : vector<8x64xf32>
    %cst_18 = arith.constant dense<0.000000e+00> : vector<8x128xf32>
    %31 = tpu.matmul %30, %12, %cst_18 {dimension_numbers = #tpu.dot_dimension_numbers<[1], [0], [0], [1], [0, 0, 1, 1], [], []>} : vector<8x64xf32>, vector<64x128xf32>, vector<8x128xf32> -> vector<8x128xf32>
    %32 = arith.addf %28, %31 : vector<8x128xf32>
    %33 = arith.addf %32, %13 : vector<8x128xf32>
    %34 = arith.negf %33 : vector<8x128xf32>
    %35 = math.exp %34 : vector<8x128xf32>
    %cst_19 = arith.constant 1.000000e+00 : f32
    %36 = vector.broadcast %cst_19 : f32 to vector<8x128xf32>
    %37 = arith.addf %36, %35 : vector<8x128xf32>
    %38 = arith.divf %36, %37 : vector<8x128xf32>
    %39 = math.tanh %33 : vector<8x128xf32>
    %40 = vector.extract_strided_slice %38 {offsets = [0, 0], sizes = [8, 32], strides = [1, 1]} : vector<8x128xf32> to vector<8x32xf32>
    %41 = vector.extract_strided_slice %38 {offsets = [0, 32], sizes = [8, 32], strides = [1, 1]} : vector<8x128xf32> to vector<8x32xf32>
    %42 = vector.extract_strided_slice %39 {offsets = [0, 64], sizes = [8, 32], strides = [1, 1]} : vector<8x128xf32> to vector<8x32xf32>
    %43 = vector.extract_strided_slice %38 {offsets = [0, 96], sizes = [8, 32], strides = [1, 1]} : vector<8x128xf32> to vector<8x32xf32>
    %44 = arith.mulf %41, %20 : vector<8x32xf32>
    %45 = arith.mulf %40, %42 : vector<8x32xf32>
    %46 = arith.addf %44, %45 : vector<8x32xf32>
    %47 = math.tanh %46 : vector<8x32xf32>
    %48 = arith.mulf %43, %47 : vector<8x32xf32>
    %49 = vector.extract_strided_slice %48 {offsets = [0, 0], sizes = [4, 32], strides = [1, 1]} : vector<8x32xf32> to vector<4x32xf32>
    %c4_i32_20 = arith.constant 4 : i32
    %50 = arith.muli %c0_i32, %c4_i32_20 : i32
    %51 = arith.index_cast %50 : i32 to index
    %c0_21 = arith.constant 0 : index
    %52 = vector.load %arg12[%51, %c0_21] : memref<32x32xf32, #tpu.memory_space<vmem>>, vector<4x32xf32>
    tpu.vector_store %arg12[%51, %c0_21], %49 {strides = array<i32>} : memref<32x32xf32, #tpu.memory_space<vmem>>, vector<4x32xf32>,
    %53 = vector.extract_strided_slice %48 {offsets = [4, 0], sizes = [4, 32], strides = [1, 1]} : vector<8x32xf32> to vector<4x32xf32>
    %c4_i32_22 = arith.constant 4 : i32
    %54 = arith.muli %21, %c4_i32_22 : i32
    %55 = arith.index_cast %54 : i32 to index
    %c0_23 = arith.constant 0 : index
    %56 = vector.load %arg13[%55, %c0_23] : memref<32x32xf32, #tpu.memory_space<vmem>>, vector<4x32xf32>
    tpu.vector_store %arg13[%55, %c0_23], %53 {strides = array<i32>} : memref<32x32xf32, #tpu.memory_space<vmem>>, vector<4x32xf32>,
    %c1_i32 = arith.constant 1 : i32
    %c7_i32_24 = arith.constant 7 : i32
    %57 = arith.subi %c7_i32_24, %c1_i32 : i32
    %c4_i32_25 = arith.constant 4 : i32
    %58 = arith.muli %c1_i32, %c4_i32_25 : i32
    %59 = arith.index_cast %58 : i32 to index
    %c0_26 = arith.constant 0 : index
    %60 = vector.load %arg10[%59, %c0_26] : memref<32x128xf32, #tpu.memory_space<vmem>>, vector<4x128xf32>
    %c4_i32_27 = arith.constant 4 : i32
    %61 = arith.muli %57, %c4_i32_27 : i32
    %62 = arith.index_cast %61 : i32 to index
    %c0_28 = arith.constant 0 : index
    %63 = vector.load %arg11[%62, %c0_28] : memref<32x128xf32, #tpu.memory_space<vmem>>, vector<4x128xf32>
    %64 = tpu.concatenate %60, %63 in 0 : vector<4x128xf32>, vector<4x128xf32> -> vector<8x128xf32>
    %65 = tpu.concatenate %48, %48 in 1 : vector<8x32xf32>, vector<8x32xf32> -> vector<8x64xf32>
    %66 = arith.mulf %65, %9 : vector<8x64xf32>
    %cst_29 = arith.constant dense<0.000000e+00> : vector<8x128xf32>
    %67 = tpu.matmul %66, %12, %cst_29 {dimension_numbers = #tpu.dot_dimension_numbers<[1], [0], [0], [1], [0, 0, 1, 1], [], []>} : vector<8x64xf32>, vector<64x128xf32>, vector<8x128xf32> -> vector<8x128xf32>
    %68 = arith.addf %64, %67 : vector<8x128xf32>
    %69 = arith.addf %68, %13 : vector<8x128xf32>
    %70 = arith.negf %69 : vector<8x128xf32>
    %71 = math.exp %70 : vector<8x128xf32>
    %cst_30 = arith.constant 1.000000e+00 : f32
    %72 = vector.broadcast %cst_30 : f32 to vector<8x128xf32>
    %73 = arith.addf %72, %71 : vector<8x128xf32>
    %74 = arith.divf %72, %73 : vector<8x128xf32>
    %75 = math.tanh %69 : vector<8x128xf32>
    %76 = vector.extract_strided_slice %74 {offsets = [0, 0], sizes = [8, 32], strides = [1, 1]} : vector<8x128xf32> to vector<8x32xf32>
    %77 = vector.extract_strided_slice %74 {offsets = [0, 32], sizes = [8, 32], strides = [1, 1]} : vector<8x128xf32> to vector<8x32xf32>
    %78 = vector.extract_strided_slice %75 {offsets = [0, 64], sizes = [8, 32], strides = [1, 1]} : vector<8x128xf32> to vector<8x32xf32>
    %79 = vector.extract_strided_slice %74 {offsets = [0, 96], sizes = [8, 32], strides = [1, 1]} : vector<8x128xf32> to vector<8x32xf32>
    %80 = arith.mulf %77, %46 : vector<8x32xf32>
    %81 = arith.mulf %76, %78 : vector<8x32xf32>
    %82 = arith.addf %80, %81 : vector<8x32xf32>
    %83 = math.tanh %82 : vector<8x32xf32>
    %84 = arith.mulf %79, %83 : vector<8x32xf32>
    %85 = vector.extract_strided_slice %84 {offsets = [0, 0], sizes = [4, 32], strides = [1, 1]} : vector<8x32xf32> to vector<4x32xf32>
    %c4_i32_31 = arith.constant 4 : i32
    %86 = arith.muli %c1_i32, %c4_i32_31 : i32
    %87 = arith.index_cast %86 : i32 to index
    %c0_32 = arith.constant 0 : index
    %88 = vector.load %arg12[%87, %c0_32] : memref<32x32xf32, #tpu.memory_space<vmem>>, vector<4x32xf32>
    tpu.vector_store %arg12[%87, %c0_32], %85 {strides = array<i32>} : memref<32x32xf32, #tpu.memory_space<vmem>>, vector<4x32xf32>,
    %89 = vector.extract_strided_slice %84 {offsets = [4, 0], sizes = [4, 32], strides = [1, 1]} : vector<8x32xf32> to vector<4x32xf32>
    %c4_i32_33 = arith.constant 4 : i32
    %90 = arith.muli %57, %c4_i32_33 : i32
    %91 = arith.index_cast %90 : i32 to index
    %c0_34 = arith.constant 0 : index
    %92 = vector.load %arg13[%91, %c0_34] : memref<32x32xf32, #tpu.memory_space<vmem>>, vector<4x32xf32>
    tpu.vector_store %arg13[%91, %c0_34], %89 {strides = array<i32>} : memref<32x32xf32, #tpu.memory_space<vmem>>, vector<4x32xf32>,
    %c2_i32 = arith.constant 2 : i32
    %c7_i32_35 = arith.constant 7 : i32
    %93 = arith.subi %c7_i32_35, %c2_i32 : i32
    %c4_i32_36 = arith.constant 4 : i32
    %94 = arith.muli %c2_i32, %c4_i32_36 : i32
    %95 = arith.index_cast %94 : i32 to index
    %c0_37 = arith.constant 0 : index
    %96 = vector.load %arg10[%95, %c0_37] : memref<32x128xf32, #tpu.memory_space<vmem>>, vector<4x128xf32>
    %c4_i32_38 = arith.constant 4 : i32
    %97 = arith.muli %93, %c4_i32_38 : i32
    %98 = arith.index_cast %97 : i32 to index
    %c0_39 = arith.constant 0 : index
    %99 = vector.load %arg11[%98, %c0_39] : memref<32x128xf32, #tpu.memory_space<vmem>>, vector<4x128xf32>
    %100 = tpu.concatenate %96, %99 in 0 : vector<4x128xf32>, vector<4x128xf32> -> vector<8x128xf32>
    %101 = tpu.concatenate %84, %84 in 1 : vector<8x32xf32>, vector<8x32xf32> -> vector<8x64xf32>
    %102 = arith.mulf %101, %9 : vector<8x64xf32>
    %cst_40 = arith.constant dense<0.000000e+00> : vector<8x128xf32>
    %103 = tpu.matmul %102, %12, %cst_40 {dimension_numbers = #tpu.dot_dimension_numbers<[1], [0], [0], [1], [0, 0, 1, 1], [], []>} : vector<8x64xf32>, vector<64x128xf32>, vector<8x128xf32> -> vector<8x128xf32>
    %104 = arith.addf %100, %103 : vector<8x128xf32>
    %105 = arith.addf %104, %13 : vector<8x128xf32>
    %106 = arith.negf %105 : vector<8x128xf32>
    %107 = math.exp %106 : vector<8x128xf32>
    %cst_41 = arith.constant 1.000000e+00 : f32
    %108 = vector.broadcast %cst_41 : f32 to vector<8x128xf32>
    %109 = arith.addf %108, %107 : vector<8x128xf32>
    %110 = arith.divf %108, %109 : vector<8x128xf32>
    %111 = math.tanh %105 : vector<8x128xf32>
    %112 = vector.extract_strided_slice %110 {offsets = [0, 0], sizes = [8, 32], strides = [1, 1]} : vector<8x128xf32> to vector<8x32xf32>
    %113 = vector.extract_strided_slice %110 {offsets = [0, 32], sizes = [8, 32], strides = [1, 1]} : vector<8x128xf32> to vector<8x32xf32>
    %114 = vector.extract_strided_slice %111 {offsets = [0, 64], sizes = [8, 32], strides = [1, 1]} : vector<8x128xf32> to vector<8x32xf32>
    %115 = vector.extract_strided_slice %110 {offsets = [0, 96], sizes = [8, 32], strides = [1, 1]} : vector<8x128xf32> to vector<8x32xf32>
    %116 = arith.mulf %113, %82 : vector<8x32xf32>
    %117 = arith.mulf %112, %114 : vector<8x32xf32>
    %118 = arith.addf %116, %117 : vector<8x32xf32>
    %119 = math.tanh %118 : vector<8x32xf32>
    %120 = arith.mulf %115, %119 : vector<8x32xf32>
    %121 = vector.extract_strided_slice %120 {offsets = [0, 0], sizes = [4, 32], strides = [1, 1]} : vector<8x32xf32> to vector<4x32xf32>
    %c4_i32_42 = arith.constant 4 : i32
    %122 = arith.muli %c2_i32, %c4_i32_42 : i32
    %123 = arith.index_cast %122 : i32 to index
    %c0_43 = arith.constant 0 : index
    %124 = vector.load %arg12[%123, %c0_43] : memref<32x32xf32, #tpu.memory_space<vmem>>, vector<4x32xf32>
    tpu.vector_store %arg12[%123, %c0_43], %121 {strides = array<i32>} : memref<32x32xf32, #tpu.memory_space<vmem>>, vector<4x32xf32>,
    %125 = vector.extract_strided_slice %120 {offsets = [4, 0], sizes = [4, 32], strides = [1, 1]} : vector<8x32xf32> to vector<4x32xf32>
    %c4_i32_44 = arith.constant 4 : i32
    %126 = arith.muli %93, %c4_i32_44 : i32
    %127 = arith.index_cast %126 : i32 to index
    %c0_45 = arith.constant 0 : index
    %128 = vector.load %arg13[%127, %c0_45] : memref<32x32xf32, #tpu.memory_space<vmem>>, vector<4x32xf32>
    tpu.vector_store %arg13[%127, %c0_45], %125 {strides = array<i32>} : memref<32x32xf32, #tpu.memory_space<vmem>>, vector<4x32xf32>,
    %c3_i32 = arith.constant 3 : i32
    %c7_i32_46 = arith.constant 7 : i32
    %129 = arith.subi %c7_i32_46, %c3_i32 : i32
    %c4_i32_47 = arith.constant 4 : i32
    %130 = arith.muli %c3_i32, %c4_i32_47 : i32
    %131 = arith.index_cast %130 : i32 to index
    %c0_48 = arith.constant 0 : index
    %132 = vector.load %arg10[%131, %c0_48] : memref<32x128xf32, #tpu.memory_space<vmem>>, vector<4x128xf32>
    %c4_i32_49 = arith.constant 4 : i32
    %133 = arith.muli %129, %c4_i32_49 : i32
    %134 = arith.index_cast %133 : i32 to index
    %c0_50 = arith.constant 0 : index
    %135 = vector.load %arg11[%134, %c0_50] : memref<32x128xf32, #tpu.memory_space<vmem>>, vector<4x128xf32>
    %136 = tpu.concatenate %132, %135 in 0 : vector<4x128xf32>, vector<4x128xf32> -> vector<8x128xf32>
    %137 = tpu.concatenate %120, %120 in 1 : vector<8x32xf32>, vector<8x32xf32> -> vector<8x64xf32>
    %138 = arith.mulf %137, %9 : vector<8x64xf32>
    %cst_51 = arith.constant dense<0.000000e+00> : vector<8x128xf32>
    %139 = tpu.matmul %138, %12, %cst_51 {dimension_numbers = #tpu.dot_dimension_numbers<[1], [0], [0], [1], [0, 0, 1, 1], [], []>} : vector<8x64xf32>, vector<64x128xf32>, vector<8x128xf32> -> vector<8x128xf32>
    %140 = arith.addf %136, %139 : vector<8x128xf32>
    %141 = arith.addf %140, %13 : vector<8x128xf32>
    %142 = arith.negf %141 : vector<8x128xf32>
    %143 = math.exp %142 : vector<8x128xf32>
    %cst_52 = arith.constant 1.000000e+00 : f32
    %144 = vector.broadcast %cst_52 : f32 to vector<8x128xf32>
    %145 = arith.addf %144, %143 : vector<8x128xf32>
    %146 = arith.divf %144, %145 : vector<8x128xf32>
    %147 = math.tanh %141 : vector<8x128xf32>
    %148 = vector.extract_strided_slice %146 {offsets = [0, 0], sizes = [8, 32], strides = [1, 1]} : vector<8x128xf32> to vector<8x32xf32>
    %149 = vector.extract_strided_slice %146 {offsets = [0, 32], sizes = [8, 32], strides = [1, 1]} : vector<8x128xf32> to vector<8x32xf32>
    %150 = vector.extract_strided_slice %147 {offsets = [0, 64], sizes = [8, 32], strides = [1, 1]} : vector<8x128xf32> to vector<8x32xf32>
    %151 = vector.extract_strided_slice %146 {offsets = [0, 96], sizes = [8, 32], strides = [1, 1]} : vector<8x128xf32> to vector<8x32xf32>
    %152 = arith.mulf %149, %118 : vector<8x32xf32>
    %153 = arith.mulf %148, %150 : vector<8x32xf32>
    %154 = arith.addf %152, %153 : vector<8x32xf32>
    %155 = math.tanh %154 : vector<8x32xf32>
    %156 = arith.mulf %151, %155 : vector<8x32xf32>
    %157 = vector.extract_strided_slice %156 {offsets = [0, 0], sizes = [4, 32], strides = [1, 1]} : vector<8x32xf32> to vector<4x32xf32>
    %c4_i32_53 = arith.constant 4 : i32
    %158 = arith.muli %c3_i32, %c4_i32_53 : i32
    %159 = arith.index_cast %158 : i32 to index
    %c0_54 = arith.constant 0 : index
    %160 = vector.load %arg12[%159, %c0_54] : memref<32x32xf32, #tpu.memory_space<vmem>>, vector<4x32xf32>
    tpu.vector_store %arg12[%159, %c0_54], %157 {strides = array<i32>} : memref<32x32xf32, #tpu.memory_space<vmem>>, vector<4x32xf32>,
    %161 = vector.extract_strided_slice %156 {offsets = [4, 0], sizes = [4, 32], strides = [1, 1]} : vector<8x32xf32> to vector<4x32xf32>
    %c4_i32_55 = arith.constant 4 : i32
    %162 = arith.muli %129, %c4_i32_55 : i32
    %163 = arith.index_cast %162 : i32 to index
    %c0_56 = arith.constant 0 : index
    %164 = vector.load %arg13[%163, %c0_56] : memref<32x32xf32, #tpu.memory_space<vmem>>, vector<4x32xf32>
    tpu.vector_store %arg13[%163, %c0_56], %161 {strides = array<i32>} : memref<32x32xf32, #tpu.memory_space<vmem>>, vector<4x32xf32>,
    %c4_i32_57 = arith.constant 4 : i32
    %c7_i32_58 = arith.constant 7 : i32
    %165 = arith.subi %c7_i32_58, %c4_i32_57 : i32
    %c4_i32_59 = arith.constant 4 : i32
    %166 = arith.muli %c4_i32_57, %c4_i32_59 : i32
    %167 = arith.index_cast %166 : i32 to index
    %c0_60 = arith.constant 0 : index
    %168 = vector.load %arg10[%167, %c0_60] : memref<32x128xf32, #tpu.memory_space<vmem>>, vector<4x128xf32>
    %c4_i32_61 = arith.constant 4 : i32
    %169 = arith.muli %165, %c4_i32_61 : i32
    %170 = arith.index_cast %169 : i32 to index
    %c0_62 = arith.constant 0 : index
    %171 = vector.load %arg11[%170, %c0_62] : memref<32x128xf32, #tpu.memory_space<vmem>>, vector<4x128xf32>
    %172 = tpu.concatenate %168, %171 in 0 : vector<4x128xf32>, vector<4x128xf32> -> vector<8x128xf32>
    %173 = tpu.concatenate %156, %156 in 1 : vector<8x32xf32>, vector<8x32xf32> -> vector<8x64xf32>
    %174 = arith.mulf %173, %9 : vector<8x64xf32>
    %cst_63 = arith.constant dense<0.000000e+00> : vector<8x128xf32>
    %175 = tpu.matmul %174, %12, %cst_63 {dimension_numbers = #tpu.dot_dimension_numbers<[1], [0], [0], [1], [0, 0, 1, 1], [], []>} : vector<8x64xf32>, vector<64x128xf32>, vector<8x128xf32> -> vector<8x128xf32>
    %176 = arith.addf %172, %175 : vector<8x128xf32>
    %177 = arith.addf %176, %13 : vector<8x128xf32>
    %178 = arith.negf %177 : vector<8x128xf32>
    %179 = math.exp %178 : vector<8x128xf32>
    %cst_64 = arith.constant 1.000000e+00 : f32
    %180 = vector.broadcast %cst_64 : f32 to vector<8x128xf32>
    %181 = arith.addf %180, %179 : vector<8x128xf32>
    %182 = arith.divf %180, %181 : vector<8x128xf32>
    %183 = math.tanh %177 : vector<8x128xf32>
    %184 = vector.extract_strided_slice %182 {offsets = [0, 0], sizes = [8, 32], strides = [1, 1]} : vector<8x128xf32> to vector<8x32xf32>
    %185 = vector.extract_strided_slice %182 {offsets = [0, 32], sizes = [8, 32], strides = [1, 1]} : vector<8x128xf32> to vector<8x32xf32>
    %186 = vector.extract_strided_slice %183 {offsets = [0, 64], sizes = [8, 32], strides = [1, 1]} : vector<8x128xf32> to vector<8x32xf32>
    %187 = vector.extract_strided_slice %182 {offsets = [0, 96], sizes = [8, 32], strides = [1, 1]} : vector<8x128xf32> to vector<8x32xf32>
    %188 = arith.mulf %185, %154 : vector<8x32xf32>
    %189 = arith.mulf %184, %186 : vector<8x32xf32>
    %190 = arith.addf %188, %189 : vector<8x32xf32>
    %191 = math.tanh %190 : vector<8x32xf32>
    %192 = arith.mulf %187, %191 : vector<8x32xf32>
    %193 = vector.extract_strided_slice %192 {offsets = [0, 0], sizes = [4, 32], strides = [1, 1]} : vector<8x32xf32> to vector<4x32xf32>
    %c4_i32_65 = arith.constant 4 : i32
    %194 = arith.muli %c4_i32_57, %c4_i32_65 : i32
    %195 = arith.index_cast %194 : i32 to index
    %c0_66 = arith.constant 0 : index
    %196 = vector.load %arg12[%195, %c0_66] : memref<32x32xf32, #tpu.memory_space<vmem>>, vector<4x32xf32>
    tpu.vector_store %arg12[%195, %c0_66], %193 {strides = array<i32>} : memref<32x32xf32, #tpu.memory_space<vmem>>, vector<4x32xf32>,
    %197 = vector.extract_strided_slice %192 {offsets = [4, 0], sizes = [4, 32], strides = [1, 1]} : vector<8x32xf32> to vector<4x32xf32>
    %c4_i32_67 = arith.constant 4 : i32
    %198 = arith.muli %165, %c4_i32_67 : i32
    %199 = arith.index_cast %198 : i32 to index
    %c0_68 = arith.constant 0 : index
    %200 = vector.load %arg13[%199, %c0_68] : memref<32x32xf32, #tpu.memory_space<vmem>>, vector<4x32xf32>
    tpu.vector_store %arg13[%199, %c0_68], %197 {strides = array<i32>} : memref<32x32xf32, #tpu.memory_space<vmem>>, vector<4x32xf32>,
    %c5_i32 = arith.constant 5 : i32
    %c7_i32_69 = arith.constant 7 : i32
    %201 = arith.subi %c7_i32_69, %c5_i32 : i32
    %c4_i32_70 = arith.constant 4 : i32
    %202 = arith.muli %c5_i32, %c4_i32_70 : i32
    %203 = arith.index_cast %202 : i32 to index
    %c0_71 = arith.constant 0 : index
    %204 = vector.load %arg10[%203, %c0_71] : memref<32x128xf32, #tpu.memory_space<vmem>>, vector<4x128xf32>
    %c4_i32_72 = arith.constant 4 : i32
    %205 = arith.muli %201, %c4_i32_72 : i32
    %206 = arith.index_cast %205 : i32 to index
    %c0_73 = arith.constant 0 : index
    %207 = vector.load %arg11[%206, %c0_73] : memref<32x128xf32, #tpu.memory_space<vmem>>, vector<4x128xf32>
    %208 = tpu.concatenate %204, %207 in 0 : vector<4x128xf32>, vector<4x128xf32> -> vector<8x128xf32>
    %209 = tpu.concatenate %192, %192 in 1 : vector<8x32xf32>, vector<8x32xf32> -> vector<8x64xf32>
    %210 = arith.mulf %209, %9 : vector<8x64xf32>
    %cst_74 = arith.constant dense<0.000000e+00> : vector<8x128xf32>
    %211 = tpu.matmul %210, %12, %cst_74 {dimension_numbers = #tpu.dot_dimension_numbers<[1], [0], [0], [1], [0, 0, 1, 1], [], []>} : vector<8x64xf32>, vector<64x128xf32>, vector<8x128xf32> -> vector<8x128xf32>
    %212 = arith.addf %208, %211 : vector<8x128xf32>
    %213 = arith.addf %212, %13 : vector<8x128xf32>
    %214 = arith.negf %213 : vector<8x128xf32>
    %215 = math.exp %214 : vector<8x128xf32>
    %cst_75 = arith.constant 1.000000e+00 : f32
    %216 = vector.broadcast %cst_75 : f32 to vector<8x128xf32>
    %217 = arith.addf %216, %215 : vector<8x128xf32>
    %218 = arith.divf %216, %217 : vector<8x128xf32>
    %219 = math.tanh %213 : vector<8x128xf32>
    %220 = vector.extract_strided_slice %218 {offsets = [0, 0], sizes = [8, 32], strides = [1, 1]} : vector<8x128xf32> to vector<8x32xf32>
    %221 = vector.extract_strided_slice %218 {offsets = [0, 32], sizes = [8, 32], strides = [1, 1]} : vector<8x128xf32> to vector<8x32xf32>
    %222 = vector.extract_strided_slice %219 {offsets = [0, 64], sizes = [8, 32], strides = [1, 1]} : vector<8x128xf32> to vector<8x32xf32>
    %223 = vector.extract_strided_slice %218 {offsets = [0, 96], sizes = [8, 32], strides = [1, 1]} : vector<8x128xf32> to vector<8x32xf32>
    %224 = arith.mulf %221, %190 : vector<8x32xf32>
    %225 = arith.mulf %220, %222 : vector<8x32xf32>
    %226 = arith.addf %224, %225 : vector<8x32xf32>
    %227 = math.tanh %226 : vector<8x32xf32>
    %228 = arith.mulf %223, %227 : vector<8x32xf32>
    %229 = vector.extract_strided_slice %228 {offsets = [0, 0], sizes = [4, 32], strides = [1, 1]} : vector<8x32xf32> to vector<4x32xf32>
    %c4_i32_76 = arith.constant 4 : i32
    %230 = arith.muli %c5_i32, %c4_i32_76 : i32
    %231 = arith.index_cast %230 : i32 to index
    %c0_77 = arith.constant 0 : index
    %232 = vector.load %arg12[%231, %c0_77] : memref<32x32xf32, #tpu.memory_space<vmem>>, vector<4x32xf32>
    tpu.vector_store %arg12[%231, %c0_77], %229 {strides = array<i32>} : memref<32x32xf32, #tpu.memory_space<vmem>>, vector<4x32xf32>,
    %233 = vector.extract_strided_slice %228 {offsets = [4, 0], sizes = [4, 32], strides = [1, 1]} : vector<8x32xf32> to vector<4x32xf32>
    %c4_i32_78 = arith.constant 4 : i32
    %234 = arith.muli %201, %c4_i32_78 : i32
    %235 = arith.index_cast %234 : i32 to index
    %c0_79 = arith.constant 0 : index
    %236 = vector.load %arg13[%235, %c0_79] : memref<32x32xf32, #tpu.memory_space<vmem>>, vector<4x32xf32>
    tpu.vector_store %arg13[%235, %c0_79], %233 {strides = array<i32>} : memref<32x32xf32, #tpu.memory_space<vmem>>, vector<4x32xf32>,
    %c6_i32 = arith.constant 6 : i32
    %c7_i32_80 = arith.constant 7 : i32
    %237 = arith.subi %c7_i32_80, %c6_i32 : i32
    %c4_i32_81 = arith.constant 4 : i32
    %238 = arith.muli %c6_i32, %c4_i32_81 : i32
    %239 = arith.index_cast %238 : i32 to index
    %c0_82 = arith.constant 0 : index
    %240 = vector.load %arg10[%239, %c0_82] : memref<32x128xf32, #tpu.memory_space<vmem>>, vector<4x128xf32>
    %c4_i32_83 = arith.constant 4 : i32
    %241 = arith.muli %237, %c4_i32_83 : i32
    %242 = arith.index_cast %241 : i32 to index
    %c0_84 = arith.constant 0 : index
    %243 = vector.load %arg11[%242, %c0_84] : memref<32x128xf32, #tpu.memory_space<vmem>>, vector<4x128xf32>
    %244 = tpu.concatenate %240, %243 in 0 : vector<4x128xf32>, vector<4x128xf32> -> vector<8x128xf32>
    %245 = tpu.concatenate %228, %228 in 1 : vector<8x32xf32>, vector<8x32xf32> -> vector<8x64xf32>
    %246 = arith.mulf %245, %9 : vector<8x64xf32>
    %cst_85 = arith.constant dense<0.000000e+00> : vector<8x128xf32>
    %247 = tpu.matmul %246, %12, %cst_85 {dimension_numbers = #tpu.dot_dimension_numbers<[1], [0], [0], [1], [0, 0, 1, 1], [], []>} : vector<8x64xf32>, vector<64x128xf32>, vector<8x128xf32> -> vector<8x128xf32>
    %248 = arith.addf %244, %247 : vector<8x128xf32>
    %249 = arith.addf %248, %13 : vector<8x128xf32>
    %250 = arith.negf %249 : vector<8x128xf32>
    %251 = math.exp %250 : vector<8x128xf32>
    %cst_86 = arith.constant 1.000000e+00 : f32
    %252 = vector.broadcast %cst_86 : f32 to vector<8x128xf32>
    %253 = arith.addf %252, %251 : vector<8x128xf32>
    %254 = arith.divf %252, %253 : vector<8x128xf32>
    %255 = math.tanh %249 : vector<8x128xf32>
    %256 = vector.extract_strided_slice %254 {offsets = [0, 0], sizes = [8, 32], strides = [1, 1]} : vector<8x128xf32> to vector<8x32xf32>
    %257 = vector.extract_strided_slice %254 {offsets = [0, 32], sizes = [8, 32], strides = [1, 1]} : vector<8x128xf32> to vector<8x32xf32>
    %258 = vector.extract_strided_slice %255 {offsets = [0, 64], sizes = [8, 32], strides = [1, 1]} : vector<8x128xf32> to vector<8x32xf32>
    %259 = vector.extract_strided_slice %254 {offsets = [0, 96], sizes = [8, 32], strides = [1, 1]} : vector<8x128xf32> to vector<8x32xf32>
    %260 = arith.mulf %257, %226 : vector<8x32xf32>
    %261 = arith.mulf %256, %258 : vector<8x32xf32>
    %262 = arith.addf %260, %261 : vector<8x32xf32>
    %263 = math.tanh %262 : vector<8x32xf32>
    %264 = arith.mulf %259, %263 : vector<8x32xf32>
    %265 = vector.extract_strided_slice %264 {offsets = [0, 0], sizes = [4, 32], strides = [1, 1]} : vector<8x32xf32> to vector<4x32xf32>
    %c4_i32_87 = arith.constant 4 : i32
    %266 = arith.muli %c6_i32, %c4_i32_87 : i32
    %267 = arith.index_cast %266 : i32 to index
    %c0_88 = arith.constant 0 : index
    %268 = vector.load %arg12[%267, %c0_88] : memref<32x32xf32, #tpu.memory_space<vmem>>, vector<4x32xf32>
    tpu.vector_store %arg12[%267, %c0_88], %265 {strides = array<i32>} : memref<32x32xf32, #tpu.memory_space<vmem>>, vector<4x32xf32>,
    %269 = vector.extract_strided_slice %264 {offsets = [4, 0], sizes = [4, 32], strides = [1, 1]} : vector<8x32xf32> to vector<4x32xf32>
    %c4_i32_89 = arith.constant 4 : i32
    %270 = arith.muli %237, %c4_i32_89 : i32
    %271 = arith.index_cast %270 : i32 to index
    %c0_90 = arith.constant 0 : index
    %272 = vector.load %arg13[%271, %c0_90] : memref<32x32xf32, #tpu.memory_space<vmem>>, vector<4x32xf32>
    tpu.vector_store %arg13[%271, %c0_90], %269 {strides = array<i32>} : memref<32x32xf32, #tpu.memory_space<vmem>>, vector<4x32xf32>,
    %c7_i32_91 = arith.constant 7 : i32
    %c7_i32_92 = arith.constant 7 : i32
    %273 = arith.subi %c7_i32_92, %c7_i32_91 : i32
    %c4_i32_93 = arith.constant 4 : i32
    %274 = arith.muli %c7_i32_91, %c4_i32_93 : i32
    %275 = arith.index_cast %274 : i32 to index
    %c0_94 = arith.constant 0 : index
    %276 = vector.load %arg10[%275, %c0_94] : memref<32x128xf32, #tpu.memory_space<vmem>>, vector<4x128xf32>
    %c4_i32_95 = arith.constant 4 : i32
    %277 = arith.muli %273, %c4_i32_95 : i32
    %278 = arith.index_cast %277 : i32 to index
    %c0_96 = arith.constant 0 : index
    %279 = vector.load %arg11[%278, %c0_96] : memref<32x128xf32, #tpu.memory_space<vmem>>, vector<4x128xf32>
    %280 = tpu.concatenate %276, %279 in 0 : vector<4x128xf32>, vector<4x128xf32> -> vector<8x128xf32>
    %281 = tpu.concatenate %264, %264 in 1 : vector<8x32xf32>, vector<8x32xf32> -> vector<8x64xf32>
    %282 = arith.mulf %281, %9 : vector<8x64xf32>
    %cst_97 = arith.constant dense<0.000000e+00> : vector<8x128xf32>
    %283 = tpu.matmul %282, %12, %cst_97 {dimension_numbers = #tpu.dot_dimension_numbers<[1], [0], [0], [1], [0, 0, 1, 1], [], []>} : vector<8x64xf32>, vector<64x128xf32>, vector<8x128xf32> -> vector<8x128xf32>
    %284 = arith.addf %280, %283 : vector<8x128xf32>
    %285 = arith.addf %284, %13 : vector<8x128xf32>
    %286 = arith.negf %285 : vector<8x128xf32>
    %287 = math.exp %286 : vector<8x128xf32>
    %cst_98 = arith.constant 1.000000e+00 : f32
    %288 = vector.broadcast %cst_98 : f32 to vector<8x128xf32>
    %289 = arith.addf %288, %287 : vector<8x128xf32>
    %290 = arith.divf %288, %289 : vector<8x128xf32>
    %291 = math.tanh %285 : vector<8x128xf32>
    %292 = vector.extract_strided_slice %290 {offsets = [0, 0], sizes = [8, 32], strides = [1, 1]} : vector<8x128xf32> to vector<8x32xf32>
    %293 = vector.extract_strided_slice %290 {offsets = [0, 32], sizes = [8, 32], strides = [1, 1]} : vector<8x128xf32> to vector<8x32xf32>
    %294 = vector.extract_strided_slice %291 {offsets = [0, 64], sizes = [8, 32], strides = [1, 1]} : vector<8x128xf32> to vector<8x32xf32>
    %295 = vector.extract_strided_slice %290 {offsets = [0, 96], sizes = [8, 32], strides = [1, 1]} : vector<8x128xf32> to vector<8x32xf32>
    %296 = arith.mulf %293, %262 : vector<8x32xf32>
    %297 = arith.mulf %292, %294 : vector<8x32xf32>
    %298 = arith.addf %296, %297 : vector<8x32xf32>
    %299 = math.tanh %298 : vector<8x32xf32>
    %300 = arith.mulf %295, %299 : vector<8x32xf32>
    %301 = vector.extract_strided_slice %300 {offsets = [0, 0], sizes = [4, 32], strides = [1, 1]} : vector<8x32xf32> to vector<4x32xf32>
    %c4_i32_99 = arith.constant 4 : i32
    %302 = arith.muli %c7_i32_91, %c4_i32_99 : i32
    %303 = arith.index_cast %302 : i32 to index
    %c0_100 = arith.constant 0 : index
    %304 = vector.load %arg12[%303, %c0_100] : memref<32x32xf32, #tpu.memory_space<vmem>>, vector<4x32xf32>
    tpu.vector_store %arg12[%303, %c0_100], %301 {strides = array<i32>} : memref<32x32xf32, #tpu.memory_space<vmem>>, vector<4x32xf32>,
    %305 = vector.extract_strided_slice %300 {offsets = [4, 0], sizes = [4, 32], strides = [1, 1]} : vector<8x32xf32> to vector<4x32xf32>
    %c4_i32_101 = arith.constant 4 : i32
    %306 = arith.muli %273, %c4_i32_101 : i32
    %307 = arith.index_cast %306 : i32 to index
    %c0_102 = arith.constant 0 : index
    %308 = vector.load %arg13[%307, %c0_102] : memref<32x32xf32, #tpu.memory_space<vmem>>, vector<4x32xf32>
    tpu.vector_store %arg13[%307, %c0_102], %305 {strides = array<i32>} : memref<32x32xf32, #tpu.memory_space<vmem>>, vector<4x32xf32>,
    %c8_i32 = arith.constant 8 : i32
    %c0_103 = arith.constant 0 : index
    %c0_104 = arith.constant 0 : index
    %309 = vector.load %arg12[%c0_103, %c0_104] : memref<32x32xf32, #tpu.memory_space<vmem>>, vector<32x32xf32>
    %c0_105 = arith.constant 0 : index
    %c0_106 = arith.constant 0 : index
    %310 = vector.load %arg13[%c0_105, %c0_106] : memref<32x32xf32, #tpu.memory_space<vmem>>, vector<32x32xf32>
    %311 = tpu.concatenate %309, %310 in 1 : vector<32x32xf32>, vector<32x32xf32> -> vector<32x64xf32>
    %c0_107 = arith.constant 0 : index
    %c0_108 = arith.constant 0 : index
    %312 = vector.load %arg4[%c0_107, %c0_108] : memref<64x256xf32, #tpu.memory_space<vmem>>, vector<64x256xf32>
    %c0_109 = arith.constant 0 : index
    %c0_110 = arith.constant 0 : index
    %313 = vector.load %arg5[%c0_109, %c0_110] : memref<64x128xf32, #tpu.memory_space<vmem>>, vector<64x128xf32>
    %c0_111 = arith.constant 0 : index
    %c0_112 = arith.constant 0 : index
    %314 = vector.load %arg6[%c0_111, %c0_112] : memref<8x128xf32, #tpu.memory_space<vmem>>, vector<8x128xf32>
    %cst_113 = arith.constant dense<0.000000e+00> : vector<32x256xf32>
    %315 = tpu.matmul %311, %312, %cst_113 {dimension_numbers = #tpu.dot_dimension_numbers<[1], [0], [0], [1], [0, 0, 1, 1], [], []>} : vector<32x64xf32>, vector<64x256xf32>, vector<32x256xf32> -> vector<32x256xf32>
    %316 = vector.extract_strided_slice %315 {offsets = [0, 0], sizes = [32, 128], strides = [1, 1]} : vector<32x256xf32> to vector<32x128xf32>
    %c0_114 = arith.constant 0 : index
    %c0_115 = arith.constant 0 : index
    %317 = vector.load %arg10[%c0_114, %c0_115] : memref<32x128xf32, #tpu.memory_space<vmem>>, vector<32x128xf32>
    tpu.vector_store %arg10[%c0_114, %c0_115], %316 {strides = array<i32>} : memref<32x128xf32, #tpu.memory_space<vmem>>, vector<32x128xf32>,
    %318 = vector.extract_strided_slice %315 {offsets = [0, 128], sizes = [32, 128], strides = [1, 1]} : vector<32x256xf32> to vector<32x128xf32>
    %c0_116 = arith.constant 0 : index
    %c0_117 = arith.constant 0 : index
    %319 = vector.load %arg11[%c0_116, %c0_117] : memref<32x128xf32, #tpu.memory_space<vmem>>, vector<32x128xf32>
    tpu.vector_store %arg11[%c0_116, %c0_117], %318 {strides = array<i32>} : memref<32x128xf32, #tpu.memory_space<vmem>>, vector<32x128xf32>,
    %cst_118 = arith.constant 0.000000e+00 : f32
    %320 = vector.broadcast %cst_118 : f32 to vector<8x32xf32>
    %cst_119 = arith.constant 0.000000e+00 : f32
    %321 = vector.broadcast %cst_119 : f32 to vector<8x32xf32>
    %c0_i32_120 = arith.constant 0 : i32
    %c7_i32_121 = arith.constant 7 : i32
    %322 = arith.subi %c7_i32_121, %c0_i32_120 : i32
    %c4_i32_122 = arith.constant 4 : i32
    %323 = arith.muli %c0_i32_120, %c4_i32_122 : i32
    %324 = arith.index_cast %323 : i32 to index
    %c0_123 = arith.constant 0 : index
    %325 = vector.load %arg10[%324, %c0_123] : memref<32x128xf32, #tpu.memory_space<vmem>>, vector<4x128xf32>
    %c4_i32_124 = arith.constant 4 : i32
    %326 = arith.muli %322, %c4_i32_124 : i32
    %327 = arith.index_cast %326 : i32 to index
    %c0_125 = arith.constant 0 : index
    %328 = vector.load %arg11[%327, %c0_125] : memref<32x128xf32, #tpu.memory_space<vmem>>, vector<4x128xf32>
    %329 = tpu.concatenate %325, %328 in 0 : vector<4x128xf32>, vector<4x128xf32> -> vector<8x128xf32>
    %330 = tpu.concatenate %320, %320 in 1 : vector<8x32xf32>, vector<8x32xf32> -> vector<8x64xf32>
    %331 = arith.mulf %330, %9 : vector<8x64xf32>
    %cst_126 = arith.constant dense<0.000000e+00> : vector<8x128xf32>
    %332 = tpu.matmul %331, %313, %cst_126 {dimension_numbers = #tpu.dot_dimension_numbers<[1], [0], [0], [1], [0, 0, 1, 1], [], []>} : vector<8x64xf32>, vector<64x128xf32>, vector<8x128xf32> -> vector<8x128xf32>
    %333 = arith.addf %329, %332 : vector<8x128xf32>
    %334 = arith.addf %333, %314 : vector<8x128xf32>
    %335 = arith.negf %334 : vector<8x128xf32>
    %336 = math.exp %335 : vector<8x128xf32>
    %cst_127 = arith.constant 1.000000e+00 : f32
    %337 = vector.broadcast %cst_127 : f32 to vector<8x128xf32>
    %338 = arith.addf %337, %336 : vector<8x128xf32>
    %339 = arith.divf %337, %338 : vector<8x128xf32>
    %340 = math.tanh %334 : vector<8x128xf32>
    %341 = vector.extract_strided_slice %339 {offsets = [0, 0], sizes = [8, 32], strides = [1, 1]} : vector<8x128xf32> to vector<8x32xf32>
    %342 = vector.extract_strided_slice %339 {offsets = [0, 32], sizes = [8, 32], strides = [1, 1]} : vector<8x128xf32> to vector<8x32xf32>
    %343 = vector.extract_strided_slice %340 {offsets = [0, 64], sizes = [8, 32], strides = [1, 1]} : vector<8x128xf32> to vector<8x32xf32>
    %344 = vector.extract_strided_slice %339 {offsets = [0, 96], sizes = [8, 32], strides = [1, 1]} : vector<8x128xf32> to vector<8x32xf32>
    %345 = arith.mulf %342, %321 : vector<8x32xf32>
    %346 = arith.mulf %341, %343 : vector<8x32xf32>
    %347 = arith.addf %345, %346 : vector<8x32xf32>
    %348 = math.tanh %347 : vector<8x32xf32>
    %349 = arith.mulf %344, %348 : vector<8x32xf32>
    %c1_i32_128 = arith.constant 1 : i32
    %c7_i32_129 = arith.constant 7 : i32
    %350 = arith.subi %c7_i32_129, %c1_i32_128 : i32
    %c4_i32_130 = arith.constant 4 : i32
    %351 = arith.muli %c1_i32_128, %c4_i32_130 : i32
    %352 = arith.index_cast %351 : i32 to index
    %c0_131 = arith.constant 0 : index
    %353 = vector.load %arg10[%352, %c0_131] : memref<32x128xf32, #tpu.memory_space<vmem>>, vector<4x128xf32>
    %c4_i32_132 = arith.constant 4 : i32
    %354 = arith.muli %350, %c4_i32_132 : i32
    %355 = arith.index_cast %354 : i32 to index
    %c0_133 = arith.constant 0 : index
    %356 = vector.load %arg11[%355, %c0_133] : memref<32x128xf32, #tpu.memory_space<vmem>>, vector<4x128xf32>
    %357 = tpu.concatenate %353, %356 in 0 : vector<4x128xf32>, vector<4x128xf32> -> vector<8x128xf32>
    %358 = tpu.concatenate %349, %349 in 1 : vector<8x32xf32>, vector<8x32xf32> -> vector<8x64xf32>
    %359 = arith.mulf %358, %9 : vector<8x64xf32>
    %cst_134 = arith.constant dense<0.000000e+00> : vector<8x128xf32>
    %360 = tpu.matmul %359, %313, %cst_134 {dimension_numbers = #tpu.dot_dimension_numbers<[1], [0], [0], [1], [0, 0, 1, 1], [], []>} : vector<8x64xf32>, vector<64x128xf32>, vector<8x128xf32> -> vector<8x128xf32>
    %361 = arith.addf %357, %360 : vector<8x128xf32>
    %362 = arith.addf %361, %314 : vector<8x128xf32>
    %363 = arith.negf %362 : vector<8x128xf32>
    %364 = math.exp %363 : vector<8x128xf32>
    %cst_135 = arith.constant 1.000000e+00 : f32
    %365 = vector.broadcast %cst_135 : f32 to vector<8x128xf32>
    %366 = arith.addf %365, %364 : vector<8x128xf32>
    %367 = arith.divf %365, %366 : vector<8x128xf32>
    %368 = math.tanh %362 : vector<8x128xf32>
    %369 = vector.extract_strided_slice %367 {offsets = [0, 0], sizes = [8, 32], strides = [1, 1]} : vector<8x128xf32> to vector<8x32xf32>
    %370 = vector.extract_strided_slice %367 {offsets = [0, 32], sizes = [8, 32], strides = [1, 1]} : vector<8x128xf32> to vector<8x32xf32>
    %371 = vector.extract_strided_slice %368 {offsets = [0, 64], sizes = [8, 32], strides = [1, 1]} : vector<8x128xf32> to vector<8x32xf32>
    %372 = vector.extract_strided_slice %367 {offsets = [0, 96], sizes = [8, 32], strides = [1, 1]} : vector<8x128xf32> to vector<8x32xf32>
    %373 = arith.mulf %370, %347 : vector<8x32xf32>
    %374 = arith.mulf %369, %371 : vector<8x32xf32>
    %375 = arith.addf %373, %374 : vector<8x32xf32>
    %376 = math.tanh %375 : vector<8x32xf32>
    %377 = arith.mulf %372, %376 : vector<8x32xf32>
    %c2_i32_136 = arith.constant 2 : i32
    %c7_i32_137 = arith.constant 7 : i32
    %378 = arith.subi %c7_i32_137, %c2_i32_136 : i32
    %c4_i32_138 = arith.constant 4 : i32
    %379 = arith.muli %c2_i32_136, %c4_i32_138 : i32
    %380 = arith.index_cast %379 : i32 to index
    %c0_139 = arith.constant 0 : index
    %381 = vector.load %arg10[%380, %c0_139] : memref<32x128xf32, #tpu.memory_space<vmem>>, vector<4x128xf32>
    %c4_i32_140 = arith.constant 4 : i32
    %382 = arith.muli %378, %c4_i32_140 : i32
    %383 = arith.index_cast %382 : i32 to index
    %c0_141 = arith.constant 0 : index
    %384 = vector.load %arg11[%383, %c0_141] : memref<32x128xf32, #tpu.memory_space<vmem>>, vector<4x128xf32>
    %385 = tpu.concatenate %381, %384 in 0 : vector<4x128xf32>, vector<4x128xf32> -> vector<8x128xf32>
    %386 = tpu.concatenate %377, %377 in 1 : vector<8x32xf32>, vector<8x32xf32> -> vector<8x64xf32>
    %387 = arith.mulf %386, %9 : vector<8x64xf32>
    %cst_142 = arith.constant dense<0.000000e+00> : vector<8x128xf32>
    %388 = tpu.matmul %387, %313, %cst_142 {dimension_numbers = #tpu.dot_dimension_numbers<[1], [0], [0], [1], [0, 0, 1, 1], [], []>} : vector<8x64xf32>, vector<64x128xf32>, vector<8x128xf32> -> vector<8x128xf32>
    %389 = arith.addf %385, %388 : vector<8x128xf32>
    %390 = arith.addf %389, %314 : vector<8x128xf32>
    %391 = arith.negf %390 : vector<8x128xf32>
    %392 = math.exp %391 : vector<8x128xf32>
    %cst_143 = arith.constant 1.000000e+00 : f32
    %393 = vector.broadcast %cst_143 : f32 to vector<8x128xf32>
    %394 = arith.addf %393, %392 : vector<8x128xf32>
    %395 = arith.divf %393, %394 : vector<8x128xf32>
    %396 = math.tanh %390 : vector<8x128xf32>
    %397 = vector.extract_strided_slice %395 {offsets = [0, 0], sizes = [8, 32], strides = [1, 1]} : vector<8x128xf32> to vector<8x32xf32>
    %398 = vector.extract_strided_slice %395 {offsets = [0, 32], sizes = [8, 32], strides = [1, 1]} : vector<8x128xf32> to vector<8x32xf32>
    %399 = vector.extract_strided_slice %396 {offsets = [0, 64], sizes = [8, 32], strides = [1, 1]} : vector<8x128xf32> to vector<8x32xf32>
    %400 = vector.extract_strided_slice %395 {offsets = [0, 96], sizes = [8, 32], strides = [1, 1]} : vector<8x128xf32> to vector<8x32xf32>
    %401 = arith.mulf %398, %375 : vector<8x32xf32>
    %402 = arith.mulf %397, %399 : vector<8x32xf32>
    %403 = arith.addf %401, %402 : vector<8x32xf32>
    %404 = math.tanh %403 : vector<8x32xf32>
    %405 = arith.mulf %400, %404 : vector<8x32xf32>
    %c3_i32_144 = arith.constant 3 : i32
    %c7_i32_145 = arith.constant 7 : i32
    %406 = arith.subi %c7_i32_145, %c3_i32_144 : i32
    %c4_i32_146 = arith.constant 4 : i32
    %407 = arith.muli %c3_i32_144, %c4_i32_146 : i32
    %408 = arith.index_cast %407 : i32 to index
    %c0_147 = arith.constant 0 : index
    %409 = vector.load %arg10[%408, %c0_147] : memref<32x128xf32, #tpu.memory_space<vmem>>, vector<4x128xf32>
    %c4_i32_148 = arith.constant 4 : i32
    %410 = arith.muli %406, %c4_i32_148 : i32
    %411 = arith.index_cast %410 : i32 to index
    %c0_149 = arith.constant 0 : index
    %412 = vector.load %arg11[%411, %c0_149] : memref<32x128xf32, #tpu.memory_space<vmem>>, vector<4x128xf32>
    %413 = tpu.concatenate %409, %412 in 0 : vector<4x128xf32>, vector<4x128xf32> -> vector<8x128xf32>
    %414 = tpu.concatenate %405, %405 in 1 : vector<8x32xf32>, vector<8x32xf32> -> vector<8x64xf32>
    %415 = arith.mulf %414, %9 : vector<8x64xf32>
    %cst_150 = arith.constant dense<0.000000e+00> : vector<8x128xf32>
    %416 = tpu.matmul %415, %313, %cst_150 {dimension_numbers = #tpu.dot_dimension_numbers<[1], [0], [0], [1], [0, 0, 1, 1], [], []>} : vector<8x64xf32>, vector<64x128xf32>, vector<8x128xf32> -> vector<8x128xf32>
    %417 = arith.addf %413, %416 : vector<8x128xf32>
    %418 = arith.addf %417, %314 : vector<8x128xf32>
    %419 = arith.negf %418 : vector<8x128xf32>
    %420 = math.exp %419 : vector<8x128xf32>
    %cst_151 = arith.constant 1.000000e+00 : f32
    %421 = vector.broadcast %cst_151 : f32 to vector<8x128xf32>
    %422 = arith.addf %421, %420 : vector<8x128xf32>
    %423 = arith.divf %421, %422 : vector<8x128xf32>
    %424 = math.tanh %418 : vector<8x128xf32>
    %425 = vector.extract_strided_slice %423 {offsets = [0, 0], sizes = [8, 32], strides = [1, 1]} : vector<8x128xf32> to vector<8x32xf32>
    %426 = vector.extract_strided_slice %423 {offsets = [0, 32], sizes = [8, 32], strides = [1, 1]} : vector<8x128xf32> to vector<8x32xf32>
    %427 = vector.extract_strided_slice %424 {offsets = [0, 64], sizes = [8, 32], strides = [1, 1]} : vector<8x128xf32> to vector<8x32xf32>
    %428 = vector.extract_strided_slice %423 {offsets = [0, 96], sizes = [8, 32], strides = [1, 1]} : vector<8x128xf32> to vector<8x32xf32>
    %429 = arith.mulf %426, %403 : vector<8x32xf32>
    %430 = arith.mulf %425, %427 : vector<8x32xf32>
    %431 = arith.addf %429, %430 : vector<8x32xf32>
    %432 = math.tanh %431 : vector<8x32xf32>
    %433 = arith.mulf %428, %432 : vector<8x32xf32>
    %c4_i32_152 = arith.constant 4 : i32
    %c7_i32_153 = arith.constant 7 : i32
    %434 = arith.subi %c7_i32_153, %c4_i32_152 : i32
    %c4_i32_154 = arith.constant 4 : i32
    %435 = arith.muli %c4_i32_152, %c4_i32_154 : i32
    %436 = arith.index_cast %435 : i32 to index
    %c0_155 = arith.constant 0 : index
    %437 = vector.load %arg10[%436, %c0_155] : memref<32x128xf32, #tpu.memory_space<vmem>>, vector<4x128xf32>
    %c4_i32_156 = arith.constant 4 : i32
    %438 = arith.muli %434, %c4_i32_156 : i32
    %439 = arith.index_cast %438 : i32 to index
    %c0_157 = arith.constant 0 : index
    %440 = vector.load %arg11[%439, %c0_157] : memref<32x128xf32, #tpu.memory_space<vmem>>, vector<4x128xf32>
    %441 = tpu.concatenate %437, %440 in 0 : vector<4x128xf32>, vector<4x128xf32> -> vector<8x128xf32>
    %442 = tpu.concatenate %433, %433 in 1 : vector<8x32xf32>, vector<8x32xf32> -> vector<8x64xf32>
    %443 = arith.mulf %442, %9 : vector<8x64xf32>
    %cst_158 = arith.constant dense<0.000000e+00> : vector<8x128xf32>
    %444 = tpu.matmul %443, %313, %cst_158 {dimension_numbers = #tpu.dot_dimension_numbers<[1], [0], [0], [1], [0, 0, 1, 1], [], []>} : vector<8x64xf32>, vector<64x128xf32>, vector<8x128xf32> -> vector<8x128xf32>
    %445 = arith.addf %441, %444 : vector<8x128xf32>
    %446 = arith.addf %445, %314 : vector<8x128xf32>
    %447 = arith.negf %446 : vector<8x128xf32>
    %448 = math.exp %447 : vector<8x128xf32>
    %cst_159 = arith.constant 1.000000e+00 : f32
    %449 = vector.broadcast %cst_159 : f32 to vector<8x128xf32>
    %450 = arith.addf %449, %448 : vector<8x128xf32>
    %451 = arith.divf %449, %450 : vector<8x128xf32>
    %452 = math.tanh %446 : vector<8x128xf32>
    %453 = vector.extract_strided_slice %451 {offsets = [0, 0], sizes = [8, 32], strides = [1, 1]} : vector<8x128xf32> to vector<8x32xf32>
    %454 = vector.extract_strided_slice %451 {offsets = [0, 32], sizes = [8, 32], strides = [1, 1]} : vector<8x128xf32> to vector<8x32xf32>
    %455 = vector.extract_strided_slice %452 {offsets = [0, 64], sizes = [8, 32], strides = [1, 1]} : vector<8x128xf32> to vector<8x32xf32>
    %456 = vector.extract_strided_slice %451 {offsets = [0, 96], sizes = [8, 32], strides = [1, 1]} : vector<8x128xf32> to vector<8x32xf32>
    %457 = arith.mulf %454, %431 : vector<8x32xf32>
    %458 = arith.mulf %453, %455 : vector<8x32xf32>
    %459 = arith.addf %457, %458 : vector<8x32xf32>
    %460 = math.tanh %459 : vector<8x32xf32>
    %461 = arith.mulf %456, %460 : vector<8x32xf32>
    %c5_i32_160 = arith.constant 5 : i32
    %c7_i32_161 = arith.constant 7 : i32
    %462 = arith.subi %c7_i32_161, %c5_i32_160 : i32
    %c4_i32_162 = arith.constant 4 : i32
    %463 = arith.muli %c5_i32_160, %c4_i32_162 : i32
    %464 = arith.index_cast %463 : i32 to index
    %c0_163 = arith.constant 0 : index
    %465 = vector.load %arg10[%464, %c0_163] : memref<32x128xf32, #tpu.memory_space<vmem>>, vector<4x128xf32>
    %c4_i32_164 = arith.constant 4 : i32
    %466 = arith.muli %462, %c4_i32_164 : i32
    %467 = arith.index_cast %466 : i32 to index
    %c0_165 = arith.constant 0 : index
    %468 = vector.load %arg11[%467, %c0_165] : memref<32x128xf32, #tpu.memory_space<vmem>>, vector<4x128xf32>
    %469 = tpu.concatenate %465, %468 in 0 : vector<4x128xf32>, vector<4x128xf32> -> vector<8x128xf32>
    %470 = tpu.concatenate %461, %461 in 1 : vector<8x32xf32>, vector<8x32xf32> -> vector<8x64xf32>
    %471 = arith.mulf %470, %9 : vector<8x64xf32>
    %cst_166 = arith.constant dense<0.000000e+00> : vector<8x128xf32>
    %472 = tpu.matmul %471, %313, %cst_166 {dimension_numbers = #tpu.dot_dimension_numbers<[1], [0], [0], [1], [0, 0, 1, 1], [], []>} : vector<8x64xf32>, vector<64x128xf32>, vector<8x128xf32> -> vector<8x128xf32>
    %473 = arith.addf %469, %472 : vector<8x128xf32>
    %474 = arith.addf %473, %314 : vector<8x128xf32>
    %475 = arith.negf %474 : vector<8x128xf32>
    %476 = math.exp %475 : vector<8x128xf32>
    %cst_167 = arith.constant 1.000000e+00 : f32
    %477 = vector.broadcast %cst_167 : f32 to vector<8x128xf32>
    %478 = arith.addf %477, %476 : vector<8x128xf32>
    %479 = arith.divf %477, %478 : vector<8x128xf32>
    %480 = math.tanh %474 : vector<8x128xf32>
    %481 = vector.extract_strided_slice %479 {offsets = [0, 0], sizes = [8, 32], strides = [1, 1]} : vector<8x128xf32> to vector<8x32xf32>
    %482 = vector.extract_strided_slice %479 {offsets = [0, 32], sizes = [8, 32], strides = [1, 1]} : vector<8x128xf32> to vector<8x32xf32>
    %483 = vector.extract_strided_slice %480 {offsets = [0, 64], sizes = [8, 32], strides = [1, 1]} : vector<8x128xf32> to vector<8x32xf32>
    %484 = vector.extract_strided_slice %479 {offsets = [0, 96], sizes = [8, 32], strides = [1, 1]} : vector<8x128xf32> to vector<8x32xf32>
    %485 = arith.mulf %482, %459 : vector<8x32xf32>
    %486 = arith.mulf %481, %483 : vector<8x32xf32>
    %487 = arith.addf %485, %486 : vector<8x32xf32>
    %488 = math.tanh %487 : vector<8x32xf32>
    %489 = arith.mulf %484, %488 : vector<8x32xf32>
    %c6_i32_168 = arith.constant 6 : i32
    %c7_i32_169 = arith.constant 7 : i32
    %490 = arith.subi %c7_i32_169, %c6_i32_168 : i32
    %c4_i32_170 = arith.constant 4 : i32
    %491 = arith.muli %c6_i32_168, %c4_i32_170 : i32
    %492 = arith.index_cast %491 : i32 to index
    %c0_171 = arith.constant 0 : index
    %493 = vector.load %arg10[%492, %c0_171] : memref<32x128xf32, #tpu.memory_space<vmem>>, vector<4x128xf32>
    %c4_i32_172 = arith.constant 4 : i32
    %494 = arith.muli %490, %c4_i32_172 : i32
    %495 = arith.index_cast %494 : i32 to index
    %c0_173 = arith.constant 0 : index
    %496 = vector.load %arg11[%495, %c0_173] : memref<32x128xf32, #tpu.memory_space<vmem>>, vector<4x128xf32>
    %497 = tpu.concatenate %493, %496 in 0 : vector<4x128xf32>, vector<4x128xf32> -> vector<8x128xf32>
    %498 = tpu.concatenate %489, %489 in 1 : vector<8x32xf32>, vector<8x32xf32> -> vector<8x64xf32>
    %499 = arith.mulf %498, %9 : vector<8x64xf32>
    %cst_174 = arith.constant dense<0.000000e+00> : vector<8x128xf32>
    %500 = tpu.matmul %499, %313, %cst_174 {dimension_numbers = #tpu.dot_dimension_numbers<[1], [0], [0], [1], [0, 0, 1, 1], [], []>} : vector<8x64xf32>, vector<64x128xf32>, vector<8x128xf32> -> vector<8x128xf32>
    %501 = arith.addf %497, %500 : vector<8x128xf32>
    %502 = arith.addf %501, %314 : vector<8x128xf32>
    %503 = arith.negf %502 : vector<8x128xf32>
    %504 = math.exp %503 : vector<8x128xf32>
    %cst_175 = arith.constant 1.000000e+00 : f32
    %505 = vector.broadcast %cst_175 : f32 to vector<8x128xf32>
    %506 = arith.addf %505, %504 : vector<8x128xf32>
    %507 = arith.divf %505, %506 : vector<8x128xf32>
    %508 = math.tanh %502 : vector<8x128xf32>
    %509 = vector.extract_strided_slice %507 {offsets = [0, 0], sizes = [8, 32], strides = [1, 1]} : vector<8x128xf32> to vector<8x32xf32>
    %510 = vector.extract_strided_slice %507 {offsets = [0, 32], sizes = [8, 32], strides = [1, 1]} : vector<8x128xf32> to vector<8x32xf32>
    %511 = vector.extract_strided_slice %508 {offsets = [0, 64], sizes = [8, 32], strides = [1, 1]} : vector<8x128xf32> to vector<8x32xf32>
    %512 = vector.extract_strided_slice %507 {offsets = [0, 96], sizes = [8, 32], strides = [1, 1]} : vector<8x128xf32> to vector<8x32xf32>
    %513 = arith.mulf %510, %487 : vector<8x32xf32>
    %514 = arith.mulf %509, %511 : vector<8x32xf32>
    %515 = arith.addf %513, %514 : vector<8x32xf32>
    %516 = math.tanh %515 : vector<8x32xf32>
    %517 = arith.mulf %512, %516 : vector<8x32xf32>
    %c7_i32_176 = arith.constant 7 : i32
    %c7_i32_177 = arith.constant 7 : i32
    %518 = arith.subi %c7_i32_177, %c7_i32_176 : i32
    %c4_i32_178 = arith.constant 4 : i32
    %519 = arith.muli %c7_i32_176, %c4_i32_178 : i32
    %520 = arith.index_cast %519 : i32 to index
    %c0_179 = arith.constant 0 : index
    %521 = vector.load %arg10[%520, %c0_179] : memref<32x128xf32, #tpu.memory_space<vmem>>, vector<4x128xf32>
    %c4_i32_180 = arith.constant 4 : i32
    %522 = arith.muli %518, %c4_i32_180 : i32
    %523 = arith.index_cast %522 : i32 to index
    %c0_181 = arith.constant 0 : index
    %524 = vector.load %arg11[%523, %c0_181] : memref<32x128xf32, #tpu.memory_space<vmem>>, vector<4x128xf32>
    %525 = tpu.concatenate %521, %524 in 0 : vector<4x128xf32>, vector<4x128xf32> -> vector<8x128xf32>
    %526 = tpu.concatenate %517, %517 in 1 : vector<8x32xf32>, vector<8x32xf32> -> vector<8x64xf32>
    %527 = arith.mulf %526, %9 : vector<8x64xf32>
    %cst_182 = arith.constant dense<0.000000e+00> : vector<8x128xf32>
    %528 = tpu.matmul %527, %313, %cst_182 {dimension_numbers = #tpu.dot_dimension_numbers<[1], [0], [0], [1], [0, 0, 1, 1], [], []>} : vector<8x64xf32>, vector<64x128xf32>, vector<8x128xf32> -> vector<8x128xf32>
    %529 = arith.addf %525, %528 : vector<8x128xf32>
    %530 = arith.addf %529, %314 : vector<8x128xf32>
    %531 = arith.negf %530 : vector<8x128xf32>
    %532 = math.exp %531 : vector<8x128xf32>
    %cst_183 = arith.constant 1.000000e+00 : f32
    %533 = vector.broadcast %cst_183 : f32 to vector<8x128xf32>
    %534 = arith.addf %533, %532 : vector<8x128xf32>
    %535 = arith.divf %533, %534 : vector<8x128xf32>
    %536 = math.tanh %530 : vector<8x128xf32>
    %537 = vector.extract_strided_slice %535 {offsets = [0, 0], sizes = [8, 32], strides = [1, 1]} : vector<8x128xf32> to vector<8x32xf32>
    %538 = vector.extract_strided_slice %535 {offsets = [0, 32], sizes = [8, 32], strides = [1, 1]} : vector<8x128xf32> to vector<8x32xf32>
    %539 = vector.extract_strided_slice %536 {offsets = [0, 64], sizes = [8, 32], strides = [1, 1]} : vector<8x128xf32> to vector<8x32xf32>
    %540 = vector.extract_strided_slice %535 {offsets = [0, 96], sizes = [8, 32], strides = [1, 1]} : vector<8x128xf32> to vector<8x32xf32>
    %541 = arith.mulf %538, %515 : vector<8x32xf32>
    %542 = arith.mulf %537, %539 : vector<8x32xf32>
    %543 = arith.addf %541, %542 : vector<8x32xf32>
    %544 = math.tanh %543 : vector<8x32xf32>
    %545 = arith.mulf %540, %544 : vector<8x32xf32>
    %c8_i32_184 = arith.constant 8 : i32
    %546 = vector.extract_strided_slice %545 {offsets = [0, 0], sizes = [4, 32], strides = [1, 1]} : vector<8x32xf32> to vector<4x32xf32>
    %547 = vector.extract_strided_slice %545 {offsets = [4, 0], sizes = [4, 32], strides = [1, 1]} : vector<8x32xf32> to vector<4x32xf32>
    %548 = tpu.concatenate %546, %547 in 1 : vector<4x32xf32>, vector<4x32xf32> -> vector<4x64xf32>
    %c0_185 = arith.constant 0 : index
    %c0_186 = arith.constant 0 : index
    %549 = vector.load %arg7[%c0_185, %c0_186] : memref<64x2xf32, #tpu.memory_space<vmem>>, vector<64x2xf32>
    %cst_187 = arith.constant dense<0.000000e+00> : vector<4x2xf32>
    %550 = tpu.matmul %548, %549, %cst_187 {dimension_numbers = #tpu.dot_dimension_numbers<[1], [0], [0], [1], [0, 0, 1, 1], [], []>} : vector<4x64xf32>, vector<64x2xf32>, vector<4x2xf32> -> vector<4x2xf32>
    %c0_188 = arith.constant 0 : index
    %c0_189 = arith.constant 0 : index
    %551 = vector.load %arg8[%c0_188, %c0_189] : memref<1x2xf32, #tpu.memory_space<vmem>>, vector<1x2xf32>
    %552 = vector.broadcast %551 : vector<1x2xf32> to vector<4x2xf32>
    %553 = arith.addf %550, %552 : vector<4x2xf32>
    %cst_190 = arith.constant dense<0xFF800000> : vector<4xf32>
    %554 = vector.multi_reduction <maximumf>, %553, %cst_190 [1] : vector<4x2xf32> to vector<4xf32>
    %555 = vector.shape_cast %554 : vector<4xf32> to vector<4x1xf32>
    %556 = vector.broadcast %555 : vector<4x1xf32> to vector<4x2xf32>
    %557 = arith.subf %553, %556 : vector<4x2xf32>
    %558 = math.exp %557 : vector<4x2xf32>
    %cst_191 = arith.constant dense<0.000000e+00> : vector<4xf32>
    %559 = vector.multi_reduction <add>, %558, %cst_191 [1] : vector<4x2xf32> to vector<4xf32>
    %560 = vector.shape_cast %559 : vector<4xf32> to vector<4x1xf32>
    %561 = math.log %560 : vector<4x1xf32>
    %562 = arith.addf %561, %555 : vector<4x1xf32>
    %563 = vector.broadcast %562 : vector<4x1xf32> to vector<4x2xf32>
    %564 = arith.subf %553, %563 : vector<4x2xf32>
    %c0_192 = arith.constant 0 : index
    %c0_193 = arith.constant 0 : index
    %565 = vector.load %arg9[%c0_192, %c0_193] : memref<4x2xf32, #tpu.memory_space<vmem>>, vector<4x2xf32>
    tpu.vector_store %arg9[%c0_192, %c0_193], %564 {strides = array<i32>} : memref<4x2xf32, #tpu.memory_space<vmem>>, vector<4x2xf32>,
    return
  }
}

</mosaic_0001>

<bundles_post_ra>
// kernel: forward.1
= control target key start
LH: loop header
LB: loop body
LE: loop exit
PB: predicated region body
PF: predicated region fallthrough
CT: control target
= control target key end

     0   :  { %v3207_v3 = vmov 0.0   ;;  %v3208_v4 = vmov 0.0|0.0   ;;  %vm3209_vm0 = vmmov 0   ;;  %v32_v16 = vlaneseq  ;;  %s3211_s21 = smov 64   ;;  %s3881_s1 = inlined_call_operand.vmem [shape: f32[100,256], index: 1, kind: input, shape index: {}]   ;;  %s3882_s2 = inlined_call_operand.vmem [shape: f32[64,128], index: 2, kind: input, shape index: {}]   ;;  %s3883_s0 = inlined_call_operand.vmem [shape: f32[32,100], index: 0, kind: input, shape index: {}]   ;;  %s3884_s3 = inlined_call_operand.vmem [shape: f32[8,128], index: 3, kind: input, shape index: {}]   ;;  %s3885_s4 = inlined_call_operand.vmem [shape: f32[64,256], index: 4, kind: input, shape index: {}]   ;;  %s3886_s5 = inlined_call_operand.vmem [shape: f32[64,128], index: 5, kind: input, shape index: {}]   ;;  %s3887_s6 = inlined_call_operand.vmem [shape: f32[8,128], index: 6, kind: input, shape index: {}]   ;;  %s3888_s7 = inlined_call_operand.vmem [shape: f32[64,2], index: 7, kind: input, shape index: {}]   ;;  %s3889_s8 = inlined_call_operand.vmem [shape: f32[1,2], index: 8, kind: input, shape index: {}]   ;;  %s3890_s9 = inlined_call_operand.vmem [shape: f32[4,2], index: 9, kind: output, shape index: {}]  }
   0x1   :  { %v47_v0 = vld [vmem:[%s3881_s1 + $0x8] sm:$0xff]  ;;  %v49_v1 = vld [vmem:[%s3881_s1 + $0x18] sm:$0xff]  ;;  %v46_v2 = vld [vmem:[%s3881_s1] sm:$0xff]  ;;  %165 = vmatprep.mubr.f32.mxu0 %v3207_v3  ;;  %2849 = vmatprep.subr.bf16.mxu1 %v3208_v4  ;;  %vm3210_vm4 = vmmov 1   ;;  %vm94_vm6 = vcmask 1043456   ;;  %vm205_vm7 = vcmask 523264  }
   0x2   :  { %v2825_v5 = vpack.c.bf16 %v49_v1, %v47_v0  ;;  %v48_v6 = vld [vmem:[%s3881_s1 + $0x10] sm:$0xff]  ;;  %v51_v7 = vld [vmem:[%s3881_s1 + $0x28] sm:$0xff]  ;;  %v53_v8 = vld [vmem:[%s3881_s1 + $0x38] sm:$0xff]  ;;  %2518 = vmatprep.mubr.msk.f32.mxu1 %vm3209_vm0, %v3207_v3  ;;  %v33_v24 = vshrl.u32 %v32_v16, 7  ;;  %v35_v25 = vand.u32 127, %v32_v16  ;;  %vm81_vm8 = vcmask 818176  }
   0x3   :  { %v2827_v9 = vpack.c.bf16 %v48_v6, %v46_v2  ;;  %v2829_v10 = vpack.c.bf16 %v53_v8, %v51_v7  ;;  %v50_v11 = vld [vmem:[%s3881_s1 + $0x20] sm:$0xff]  ;;  %v52_v12 = vld [vmem:[%s3881_s1 + $0x30] sm:$0xff]  ;;  %v55_v13 = vld [vmem:[%s3881_s1 + $0x48] sm:$0xff]  ;;  %vm309_vm9 = vcmask 257024   ;;  %vm311_vm10 = vcmask 261124  }
   0x4   :  { %2826 = vmatprep.subr.bf16.mxu0 %v2825_v5  ;;  %v57_v14 = vld [vmem:[%s3881_s1 + $0x58] sm:$0xff]  ;;  %v2831_v15 = vpack.c.bf16 %v52_v12, %v50_v11  ;;  %v54_v18 = vld [vmem:[%s3881_s1 + $0x40] sm:$0xff]  ;;  %v56_v19 = vld [vmem:[%s3881_s1 + $0x50] sm:$0xff]  ;;  %vm36_vm1 = vcmp.lt.s32.totalorder %v33_v24, 4  ;;  %vm37_vm2 = vcmp.lt.s32.totalorder %v35_v25, 32  ;;  %vm322_vm11 = vcmask 261120  }
   0x5   :  { %2828 = vmatpush1.bf16.msra.mxu0 %v2827_v9  ;;  %v2833_v17 = vpack.c.bf16 %v57_v14, %v55_v13  ;;  %v59_v20 = vld [vmem:[%s3881_s1 + $0x68] sm:$0xff]  ;;  %v61_v21 = vld [vmem:[%s3881_s1 + $0x78] sm:$0xff]  ;;  %v2835_v22 = vpack.c.bf16 %v56_v19, %v54_v18  ;;  %v58_v23 = vld [vmem:[%s3881_s1 + $0x60] sm:$0xff]  ;;  %vm2285_vm12 = vcmask 11264  }
   0x6   :  { %2830 = vmatprep.subr.bf16.mxu0 %v2829_v10  ;;  %v2837_v26 = vpack.c.bf16 %v61_v21, %v59_v20  ;;  %v60_v27 = vld [vmem:[%s3881_s1 + $0x70] sm:$0xff]  ;;  %v63_v28 = vld [vmem:[%s3881_s1 + $0x88] sm:$0xff]  ;;  %v72_v29 = vld [vmem:[%s3882_s2] sm:$0xff] }
   0x7   :  { %v65_v30 = vld [vmem:[%s3881_s1 + $0x98] sm:$0xff]  ;;  %v73_v31 = vld [vmem:[%s3882_s2 + $0x8] sm:$0xff]  ;;  %v74_v32 = vld [vmem:[%s3882_s2 + $0x10] sm:$0xff]  ;;  %v2839_v35 = vpack.c.bf16 %v60_v27, %v58_v23 }
   0x8   :  { %v3330_v33 = vpack.c.bf16 %v73_v31, %v72_v29  ;;  %v75_v34 = vld [vmem:[%s3882_s2 + $0x18] sm:$0xff]  ;;  %v2841_v36 = vpack.c.bf16 %v65_v30, %v63_v28  ;;  %v62_v37 = vld [vmem:[%s3881_s1 + $0x80] sm:$0xff]  ;;  %v64_v38 = vld [vmem:[%s3881_s1 + $0x90] sm:$0xff] }
   0x9   :  { %2832 = vmatpush1.bf16.msra.mxu0 %v2831_v15  ;;  %v67_v39 = vld [vmem:[%s3881_s1 + $0xa8] sm:$0xff]  ;;  %v3345_v40 = vpack.c.bf16 %v75_v34, %v74_v32  ;;  %v69_v41 = vld [vmem:[%s3881_s1 + $0xb8] sm:$0xff]  ;;  %v76_v42 = vld [vmem:[%s3882_s2 + $0x20] sm:$0xff]  ;;  %v2843_v44 = vpack.c.bf16 %v64_v38, %v62_v37 }
   0xa   :  { %2834 = vmatprep.subr.bf16.mxu0 %v2833_v17  ;;  %2851 = vmatpush3.bf16.msra.mxu1 %v3330_v33  ;;  %v77_v43 = vld [vmem:[%s3882_s2 + $0x28] sm:$0xff]  ;;  %vm38_vm3 = vmxor %vm36_vm1, %vm37_vm2  ;;  %v2845_v45 = vpack.c.bf16 %v69_v41, %v67_v39  ;;  %v66_v46 = vld [vmem:[%s3881_s1 + $0xa0] sm:$0xff] }
   0xb   :  { %2852 = vmatprep.subr.bf16.mxu1 %v3208_v4  ;;  %v68_v47 = vld [vmem:[%s3881_s1 + $0xb0] sm:$0xff]  ;;  %v3364_v48 = vpack.c.bf16 %v77_v43, %v76_v42  ;;  %v79_v50 = vld [vmem:[%s3882_s2 + $0x38] sm:$0xff]  ;;  %vm39_vm5 = vmxor %vm38_vm3, %vm3210_vm4 }
   0xc   :  { %v78_v49 = vld [vmem:[%s3882_s2 + $0x30] sm:$0xff]  ;;  %v2847_v51 = vpack.c.bf16 %v68_v47, %v66_v46  ;;  %v3377_v53 = vsel %vm39_vm5, 1.0, %v3207_v3  ;;  %v71_v54 = vld [vmem:[%s3881_s1 + $0xc8] sm:$0xf]  ;;  %v70_v56 = vld [vmem:[%s3881_s1 + $0xc0] sm:$0xf] }
   0xd   :  { %2836 = vmatpush1.bf16.msra.mxu0 %v2835_v22  ;;  %v3374_v52 = vpack.c.bf16 %v79_v50, %v78_v49  ;;  %v3384_v55 = vmul.f32 0.0, %v3377_v53  ;;  %v42_v57 = vld [vmem:[%s3883_s0] sm:$0xff]  ;;  %v43_v58 = vld [vmem:[%s3883_s0 + $0x8] sm:$0xff]  ;;  %v44_v59 = vld [vmem:[%s3883_s0 + $0x10] sm:$0xff] }
   0xe   :  { %2838 = vmatprep.subr.bf16.mxu0 %v2837_v26  ;;  %2854 = vmatpush3.bf16.msra.mxu1 %v3345_v40  ;;  %v45_v60 = vld [vmem:[%s3883_s0 + $0x18] sm:$0xff]  ;;  %v3438_v12 = vld [vmem:[%s3884_s3] sm:$0xff]  ;;  %s3212_s3 = smov 32  }
   0xf   :  { %2855 = vmatprep.subr.bf16.mxu1 %v3208_v4 }
  0x11   :  { %2840 = vmatpush1.bf16.msra.mxu0 %v2839_v35 }
  0x12   :  { %2842 = vmatprep.subr.bf16.mxu0 %v2841_v36  ;;  %2857 = vmatpush3.bf16.msra.mxu1 %v3364_v48 }
  0x13   :  { %2858 = vmatprep.subr.bf16.mxu1 %v3208_v4 }
  0x15   :  { %2844 = vmatpush1.bf16.msra.mxu0 %v2843_v44 }
  0x16   :  { %2846 = vmatprep.subr.bf16.mxu0 %v2845_v45  ;;  %2860 = vmatpush3.bf16.msra.mxu1 %v3374_v52 }
  0x17   :  { %2861 = vmatprep.subr.bf16.mxu1 %v3208_v4 }
  0x19   :  { %2848 = vmatpush1.bf16.msra.mxu0 %v2847_v51  ;;  %2519 = vmatmul.mubr.msk.f32.vlgmr.msra.gmra.mrb[0].mxu1 %vm205_vm7, %v3384_v55 }
  0x1a   :  { %2305 = vmatprep.subr.msk.mxu0 %vm94_vm6, %v71_v54  ;;  %2863 = vmatpush3.bf16.msra.mxu1 %v3330_v33 }
  0x1b   :  { %2864 = vmatprep.subr.bf16.mxu1 %v3208_v4  ;;  %2537 = vmatprep.mubr.msk.f32.mxu1 %vm3209_vm0, %v3207_v3 }
  0x1d   :  { %2306 = vmatpush1.msk.msra.mxu0 %vm94_vm6, %v70_v56 }
  0x1e   :  { %2307 = vmatmul.mubr.msk.f32.vlgmr.msra.gmra.mrb[0].mxu0 %vm81_vm8, %v42_v57  ;;  %2873 = vmatprep.subr.bf16.mxu0 %v3208_v4 }
  0x1f   :  { %171 = vmatprep.mubr.f32.mxu0 %v3207_v3  ;;  %2875 = vmatpush3.bf16.msra.mxu0 %v3330_v33 }
  0x20   :  { %2866 = vmatpush3.bf16.msra.mxu1 %v3345_v40  ;;  %2876 = vmatprep.subr.bf16.mxu0 %v3208_v4 }
  0x21   :  { %2867 = vmatprep.subr.bf16.mxu1 %v3208_v4 }
  0x22   :  { %2308 = vmatmul.mubr.msk.f32.gmra.mrb[2].mxu0 %vm81_vm8, %v43_v58 }
  0x23   :  { %177 = vmatprep.mubr.f32.mxu0 %v3207_v3  ;;  %2878 = vmatpush3.bf16.msra.mxu0 %v3345_v40 }
  0x24   :  { %2869 = vmatpush3.bf16.msra.mxu1 %v3364_v48  ;;  %2879 = vmatprep.subr.bf16.mxu0 %v3208_v4 }
  0x25   :  { %2870 = vmatprep.subr.bf16.mxu1 %v3208_v4 }
  0x26   :  { %2309 = vmatmul.mubr.msk.f32.gmra.mrb[4].mxu0 %vm81_vm8, %v44_v59 }
  0x27   :  { %183 = vmatprep.mubr.f32.mxu0 %v3207_v3  ;;  %2881 = vmatpush3.bf16.msra.mxu0 %v3364_v48 }
  0x28   :  { %2872 = vmatpush3.bf16.msra.mxu1 %v3374_v52  ;;  %2882 = vmatprep.subr.bf16.mxu0 %v3208_v4 }
  0x29   :  { %2885 = vmatprep.subr.bf16.mxu1 %v3208_v4 }
  0x2a   :  { %2310 = vmatmul.mubr.msk.f32.gmra.mrb[6].mxu0 %vm81_vm8, %v45_v60 }
  0x2b   :  { %2556 = vmatprep.mubr.msk.f32.mxu0 %vm3209_vm0, %v3207_v3  ;;  %2884 = vmatpush3.bf16.msra.mxu0 %v3374_v52 }
  0x2c   :  { %2897 = vmatprep.subr.bf16.mxu0 %v3208_v4 }
  0xec   :  { %v275_v61 = vpop.f32.mrb[0].mxu1 }
  0xed   :  { %v2520_v63 = vpop.f32.mrb[1].mxu1 }
  0xf1   :  { %v167_v62 = vpop.f32.mrb[0].mxu0 }
  0xf2   :  { %190 = vst [vmem:[#allocation2] sm:$0xff] %v167_v62  ;;  %v169_v0 = vpop.f32.mrb[1].mxu0 }
  0xf3   :  { %194 = vst [vmem:[#allocation3] sm:$0xff] %v169_v0 }
  0xf5   :  { %v173_v1 = vpop.f32.mrb[2].mxu0 }
  0xf6   :  { %191 = vst [vmem:[#allocation2 + $0x8] sm:$0xff] %v173_v1  ;;  %v175_v2 = vpop.f32.mrb[3].mxu0 }
  0xf7   :  { %195 = vst [vmem:[#allocation3 + $0x8] sm:$0xff] %v175_v2 }
  0xf9   :  { %v179_v5 = vpop.f32.mrb[4].mxu0  ;;  %v198_v11 = vld [vmem:[#allocation2] sm:$0xf]  ;;  %v313_v36 = vld [vmem:[#allocation2 + $0x4] sm:$0xf] }
  0xfa   :  { %192 = vst [vmem:[#allocation2 + $0x10] sm:$0xff] %v179_v5  ;;  %v181_v6 = vpop.f32.mrb[5].mxu0 }
  0xfb   :  { %196 = vst [vmem:[#allocation3 + $0x10] sm:$0xff] %v181_v6 }
  0xfd   :  { %v185_v7 = vpop.f32.mrb[6].mxu0  ;;  %v430_v2 = vld [vmem:[#allocation2 + $0x8] sm:$0xf] }
  0xfe   :  { %193 = vst [vmem:[#allocation2 + $0x18] sm:$0xff] %v185_v7  ;;  %v187_v8 = vpop.f32.mrb[7].mxu0 }
  0xff   :  { %197 = vst [vmem:[#allocation3 + $0x18] sm:$0xff] %v187_v8 }
 0x102   :  { %v431_v0 = vld [vmem:[#allocation3 + $0x14] sm:$0xf] }
 0x103   :  { %v433_v1 = vrot.slane %v431_v0, 4 }
 0x105   :  { %v435_v5 = vsel %vm94_vm6, %v430_v2, %v433_v1 }
 0x106   :  { %v199_v9 = vld [vmem:[#allocation3 + $0x1c] sm:$0xf]  ;;  %v314_v34 = vld [vmem:[#allocation3 + $0x18] sm:$0xf] }
 0x107   :  { %v201_v10 = vrot.slane %v199_v9, 4  ;;  %v316_v35 = vrot.slane %v314_v34, 4 }
 0x109   :  { %v203_v13 = vsel %vm94_vm6, %v198_v11, %v201_v10  ;;  %v318_v37 = vsel %vm94_vm6, %v313_v36, %v316_v35 }
 0x10a   :  { %v279_v14 = vadd.f32 %v275_v61, %v203_v13 }
 0x10c   :  { %v280_v15 = vadd.f32 %v279_v14, %v3438_v12 }
 0x10e   :  { %3075 = vtanh.f32 %v280_v15  ;;  %v2312_v17 = vmul.f32 -1.442695, %v280_v15 }
 0x110   :  { %3077 = vpow2.f32 %v2312_v17 }
 0x118   :  { %v3076_v16 = vpop.eup %3075 }
 0x119   :  { %290 = vrot.lane.b32.xlu0 %v3076_v16, %s3211_s21 }
 0x11a   :  { %v3078_v18 = vpop.eup %3077 }
 0x11b   :  { %v284_v19 = vadd.f32 1.0, %v3078_v18 }
 0x11d   :  { %3079 = vrcp.f32 %v284_v19 }
 0x127   :  { %v3080_v20 = vpop.eup %3079 }
 0x128   :  { %v288_v23 = vmul.f32 0.0, %v3080_v20 }
 0x18b   :  { %v291_v21 = vpop.permute.xlu0 %290 }
 0x18c   :  { %v293_v22 = vmul.f32 %v3080_v20, %v291_v21 }
 0x18e   :  { %295 = vrot.lane.b32.xlu0 %v293_v22, %s3212_s3 }
 0x200   :  { %v296_v24 = vpop.permute.xlu0 %295 }
 0x201   :  { %v298_v25 = vadd.f32 %v296_v24, %v288_v23 }
 0x203   :  { %3081 = vtanh.f32 %v298_v25 }
 0x20d   :  { %v3082_v26 = vpop.eup %3081 }
 0x20e   :  { %301 = vrot.lane.b32.xlu1 %v3082_v26, %s3211_s21 }
 0x280   :  { %v302_v27 = vpop.permute.xlu1 %301 }
 0x281   :  { %v304_v28 = vmul.f32 %v3080_v20, %v302_v27 }
 0x283   :  { %319 = vrot.lane.b32.xlu0 %v304_v28, %s3211_s21  ;;  %306 = vrot.lane.b32.xlu1 %v304_v28, %s3212_s3  ;;  %v547_v28 = vld [vmem:[#allocation3 + $0x10] sm:$0xf] }
 0x2f5   :  { %v320_v29 = vpop.permute.xlu0 %319  ;;  %v307_v30 = vpop.permute.xlu1 %306 }
 0x2f6   :  { %310 = vst.msk [vmem:[#allocation4] sm:$0xf] %vm309_vm9, %v307_v30  ;;  %v323_v31 = vsel %vm322_vm11, %v307_v30, %v320_v29  ;;  %v549_v29 = vrot.slane %v547_v28, 4 }
 0x2f7   :  { %312 = vst.msk [vmem:[#allocation5 + $0x18] sm:$0xf0] %vm311_vm10, %v307_v30  ;;  %v324_v32 = vmul.f32 %v3377_v53, %v323_v31  ;;  %v546_v30 = vld [vmem:[#allocation2 + $0xc] sm:$0xf] }
 0x2f8   :  { %v551_v31 = vsel %vm94_vm6, %v546_v30, %v549_v29 }
 0x2f9   :  { %2538 = vmatmul.mubr.msk.f32.vlgmr.msra.gmra.mrb[2].mxu1 %vm205_vm7, %v324_v32 }
 0x2fa   :  { %2887 = vmatpush3.bf16.msra.mxu1 %v3330_v33  ;;  %2575 = vmatprep.mubr.msk.f32.mxu1 %vm3209_vm0, %v3207_v3 }
 0x2fb   :  { %2888 = vmatprep.subr.bf16.mxu1 %v3208_v4 }
 0x2fe   :  { %2890 = vmatpush3.bf16.msra.mxu1 %v3345_v40 }
 0x2ff   :  { %2891 = vmatprep.subr.bf16.mxu1 %v3208_v4 }
 0x302   :  { %2893 = vmatpush3.bf16.msra.mxu1 %v3364_v48 }
 0x303   :  { %2894 = vmatprep.subr.bf16.mxu1 %v3208_v4 }
 0x306   :  { %2896 = vmatpush3.bf16.msra.mxu1 %v3374_v52 }
 0x307   :  { %2909 = vmatprep.subr.bf16.mxu1 %v3208_v4 }
 0x3cc   :  { %v394_v38 = vpop.f32.mrb[2].mxu1 }
 0x3cd   :  { %v398_v39 = vadd.f32 %v394_v38, %v318_v37  ;;  %v2539_v41 = vpop.f32.mrb[3].mxu1 }
 0x3cf   :  { %v399_v42 = vadd.f32 %v398_v39, %v3438_v12 }
 0x3d1   :  { %3083 = vtanh.f32 %v399_v42  ;;  %v2314_v44 = vmul.f32 -1.442695, %v399_v42 }
 0x3d3   :  { %3085 = vpow2.f32 %v2314_v44 }
 0x3db   :  { %v3084_v43 = vpop.eup %3083 }
 0x3dc   :  { %409 = vrot.lane.b32.xlu1 %v3084_v43, %s3211_s21 }
 0x3dd   :  { %v3086_v45 = vpop.eup %3085 }
 0x3de   :  { %v403_v46 = vadd.f32 1.0, %v3086_v45 }
 0x3e0   :  { %3087 = vrcp.f32 %v403_v46 }
 0x3ea   :  { %v3088_v47 = vpop.eup %3087 }
 0x3eb   :  { %v407_v51 = vmul.f32 %v3088_v47, %v298_v25 }
 0x44e   :  { %v410_v49 = vpop.permute.xlu1 %409 }
 0x44f   :  { %v412_v50 = vmul.f32 %v3088_v47, %v410_v49 }
 0x451   :  { %414 = vrot.lane.b32.xlu0 %v412_v50, %s3212_s3 }
 0x4c3   :  { %v415_v54 = vpop.permute.xlu0 %414 }
 0x4c4   :  { %v417_v56 = vadd.f32 %v415_v54, %v407_v51 }
 0x4c6   :  { %3089 = vtanh.f32 %v417_v56 }
 0x4d0   :  { %v3090_v57 = vpop.eup %3089 }
 0x4d1   :  { %420 = vrot.lane.b32.xlu1 %v3090_v57, %s3211_s21 }
 0x543   :  { %v421_v58 = vpop.permute.xlu1 %420 }
 0x544   :  { %v423_v59 = vmul.f32 %v3088_v47, %v421_v58 }
 0x546   :  { %436 = vrot.lane.b32.xlu1 %v423_v59, %s3211_s21  ;;  %425 = vrot.lane.b32.xlu0 %v423_v59, %s3212_s3  ;;  %v663_v59 = vld [vmem:[#allocation3 + $0xc] sm:$0xf] }
 0x5b8   :  { %v437_v60 = vpop.permute.xlu1 %436  ;;  %v426_v61 = vpop.permute.xlu0 %425 }
 0x5b9   :  { %428 = vst.msk [vmem:[#allocation4 + $0x4] sm:$0xf] %vm309_vm9, %v426_v61  ;;  %v439_v62 = vsel %vm322_vm11, %v426_v61, %v437_v60  ;;  %v665_v60 = vrot.slane %v663_v59, 4 }
 0x5ba   :  { %429 = vst.msk [vmem:[#allocation5 + $0x14] sm:$0xf0] %vm311_vm10, %v426_v61  ;;  %v440_v63 = vmul.f32 %v3377_v53, %v439_v62  ;;  %v662_v61 = vld [vmem:[#allocation2 + $0x10] sm:$0xf] }
 0x5bb   :  { %v667_v62 = vsel %vm94_vm6, %v662_v61, %v665_v60 }
 0x5bc   :  { %2557 = vmatmul.mubr.msk.f32.vlgmr.msra.gmra.mrb[8].mxu0 %vm205_vm7, %v440_v63 }
 0x5bd   :  { %2899 = vmatpush3.bf16.msra.mxu0 %v3330_v33  ;;  %2594 = vmatprep.mubr.msk.f32.mxu0 %vm3209_vm0, %v3207_v3 }
 0x5be   :  { %2900 = vmatprep.subr.bf16.mxu0 %v3208_v4 }
 0x5c1   :  { %2902 = vmatpush3.bf16.msra.mxu0 %v3345_v40 }
 0x5c2   :  { %2903 = vmatprep.subr.bf16.mxu0 %v3208_v4 }
 0x5c5   :  { %2905 = vmatpush3.bf16.msra.mxu0 %v3364_v48 }
 0x5c6   :  { %2906 = vmatprep.subr.bf16.mxu0 %v3208_v4 }
 0x5c9   :  { %2908 = vmatpush3.bf16.msra.mxu0 %v3374_v52 }
 0x5ca   :  { %2921 = vmatprep.subr.bf16.mxu0 %v3208_v4 }
 0x68f   :  { %v510_v6 = vpop.f32.mrb[8].mxu0 }
 0x690   :  { %v514_v7 = vadd.f32 %v510_v6, %v435_v5  ;;  %v2558_v8 = vpop.f32.mrb[9].mxu0 }
 0x692   :  { %v515_v9 = vadd.f32 %v514_v7, %v3438_v12 }
 0x694   :  { %3091 = vtanh.f32 %v515_v9  ;;  %v2316_v11 = vmul.f32 -1.442695, %v515_v9 }
 0x696   :  { %3093 = vpow2.f32 %v2316_v11 }
 0x69e   :  { %v3092_v10 = vpop.eup %3091 }
 0x69f   :  { %525 = vrot.lane.b32.xlu0 %v3092_v10, %s3211_s21 }
 0x6a0   :  { %v3094_v13 = vpop.eup %3093 }
 0x6a1   :  { %v519_v14 = vadd.f32 1.0, %v3094_v13 }
 0x6a3   :  { %3095 = vrcp.f32 %v519_v14 }
 0x6ad   :  { %v3096_v15 = vpop.eup %3095 }
 0x6ae   :  { %v523_v18 = vmul.f32 %v3096_v15, %v417_v56 }
 0x711   :  { %v526_v16 = vpop.permute.xlu0 %525 }
 0x712   :  { %v528_v17 = vmul.f32 %v3096_v15, %v526_v16 }
 0x714   :  { %530 = vrot.lane.b32.xlu1 %v528_v17, %s3212_s3 }
 0x786   :  { %v531_v19 = vpop.permute.xlu1 %530 }
 0x787   :  { %v533_v20 = vadd.f32 %v531_v19, %v523_v18 }
 0x789   :  { %3097 = vtanh.f32 %v533_v20 }
 0x793   :  { %v3098_v21 = vpop.eup %3097 }
 0x794   :  { %536 = vrot.lane.b32.xlu0 %v3098_v21, %s3211_s21 }
 0x806   :  { %v537_v22 = vpop.permute.xlu0 %536 }
 0x807   :  { %v539_v23 = vmul.f32 %v3096_v15, %v537_v22 }
 0x809   :  { %552 = vrot.lane.b32.xlu0 %v539_v23, %s3211_s21  ;;  %541 = vrot.lane.b32.xlu1 %v539_v23, %s3212_s3  ;;  %v779_v23 = vld [vmem:[#allocation3 + $0x8] sm:$0xf] }
 0x87b   :  { %v553_v24 = vpop.permute.xlu0 %552  ;;  %v542_v25 = vpop.permute.xlu1 %541 }
 0x87c   :  { %544 = vst.msk [vmem:[#allocation4 + $0x8] sm:$0xf] %vm309_vm9, %v542_v25  ;;  %v555_v26 = vsel %vm322_vm11, %v542_v25, %v553_v24  ;;  %v781_v24 = vrot.slane %v779_v23, 4 }
 0x87d   :  { %545 = vst.msk [vmem:[#allocation5 + $0x10] sm:$0xf0] %vm311_vm10, %v542_v25  ;;  %v556_v27 = vmul.f32 %v3377_v53, %v555_v26 }
 0x87f   :  { %2576 = vmatmul.mubr.msk.f32.vlgmr.msra.gmra.mrb[4].mxu1 %vm205_vm7, %v556_v27 }
 0x880   :  { %2911 = vmatpush3.bf16.msra.mxu1 %v3330_v33  ;;  %2613 = vmatprep.mubr.msk.f32.mxu1 %vm3209_vm0, %v3207_v3 }
 0x881   :  { %2912 = vmatprep.subr.bf16.mxu1 %v3208_v4 }
 0x884   :  { %2914 = vmatpush3.bf16.msra.mxu1 %v3345_v40 }
 0x885   :  { %2915 = vmatprep.subr.bf16.mxu1 %v3208_v4 }
 0x888   :  { %2917 = vmatpush3.bf16.msra.mxu1 %v3364_v48 }
 0x889   :  { %2918 = vmatprep.subr.bf16.mxu1 %v3208_v4 }
 0x88c   :  { %2920 = vmatpush3.bf16.msra.mxu1 %v3374_v52 }
 0x88d   :  { %2933 = vmatprep.subr.bf16.mxu1 %v3208_v4 }
 0x952   :  { %v626_v32 = vpop.f32.mrb[4].mxu1 }
 0x953   :  { %v630_v34 = vadd.f32 %v626_v32, %v551_v31  ;;  %v2577_v35 = vpop.f32.mrb[5].mxu1 }
 0x955   :  { %v631_v36 = vadd.f32 %v630_v34, %v3438_v12 }
 0x957   :  { %3099 = vtanh.f32 %v631_v36  ;;  %v2318_v38 = vmul.f32 -1.442695, %v631_v36 }
 0x959   :  { %3101 = vpow2.f32 %v2318_v38 }
 0x961   :  { %v3100_v37 = vpop.eup %3099 }
 0x962   :  { %641 = vrot.lane.b32.xlu1 %v3100_v37, %s3211_s21 }
 0x963   :  { %v3102_v39 = vpop.eup %3101 }
 0x964   :  { %v635_v41 = vadd.f32 1.0, %v3102_v39 }
 0x966   :  { %3103 = vrcp.f32 %v635_v41 }
 0x970   :  { %v3104_v42 = vpop.eup %3103 }
 0x971   :  { %v639_v45 = vmul.f32 %v3104_v42, %v533_v20 }
 0x9d4   :  { %v642_v43 = vpop.permute.xlu1 %641 }
 0x9d5   :  { %v644_v44 = vmul.f32 %v3104_v42, %v642_v43 }
 0x9d7   :  { %646 = vrot.lane.b32.xlu0 %v644_v44, %s3212_s3 }
 0xa49   :  { %v647_v46 = vpop.permute.xlu0 %646 }
 0xa4a   :  { %v649_v47 = vadd.f32 %v647_v46, %v639_v45  ;;  %v895_v46 = vld [vmem:[#allocation3 + $0x4] sm:$0xf] }
 0xa4c   :  { %3105 = vtanh.f32 %v649_v47 }
 0xa56   :  { %v3106_v49 = vpop.eup %3105 }
 0xa57   :  { %652 = vrot.lane.b32.xlu1 %v3106_v49, %s3211_s21  ;;  %v897_v49 = vrot.slane %v895_v46, 4 }
 0xac9   :  { %v653_v50 = vpop.permute.xlu1 %652 }
 0xaca   :  { %v655_v51 = vmul.f32 %v3104_v42, %v653_v50 }
 0xacc   :  { %668 = vrot.lane.b32.xlu1 %v655_v51, %s3211_s21  ;;  %657 = vrot.lane.b32.xlu0 %v655_v51, %s3212_s3 }
 0xb3e   :  { %v669_v54 = vpop.permute.xlu1 %668  ;;  %v658_v56 = vpop.permute.xlu0 %657 }
 0xb3f   :  { %660 = vst.msk [vmem:[#allocation4 + $0xc] sm:$0xf] %vm309_vm9, %v658_v56  ;;  %v671_v57 = vsel %vm322_vm11, %v658_v56, %v669_v54 }
 0xb40   :  { %661 = vst.msk [vmem:[#allocation5 + $0xc] sm:$0xf0] %vm311_vm10, %v658_v56  ;;  %v672_v58 = vmul.f32 %v3377_v53, %v671_v57 }
 0xb42   :  { %2595 = vmatmul.mubr.msk.f32.vlgmr.msra.gmra.mrb[10].mxu0 %vm205_vm7, %v672_v58 }
 0xb43   :  { %2923 = vmatpush3.bf16.msra.mxu0 %v3330_v33  ;;  %2632 = vmatprep.mubr.msk.f32.mxu0 %vm3209_vm0, %v3207_v3 }
 0xb44   :  { %2924 = vmatprep.subr.bf16.mxu0 %v3208_v4 }
 0xb47   :  { %2926 = vmatpush3.bf16.msra.mxu0 %v3345_v40 }
 0xb48   :  { %2927 = vmatprep.subr.bf16.mxu0 %v3208_v4 }
 0xb4b   :  { %2929 = vmatpush3.bf16.msra.mxu0 %v3364_v48 }
 0xb4c   :  { %2930 = vmatprep.subr.bf16.mxu0 %v3208_v4 }
 0xb4f   :  { %2932 = vmatpush3.bf16.msra.mxu0 %v3374_v52 }
 0xc15   :  { %v742_v63 = vpop.f32.mrb[10].mxu0 }
 0xc16   :  { %v746_v0 = vadd.f32 %v742_v63, %v667_v62  ;;  %v2596_v1 = vpop.f32.mrb[11].mxu0 }
 0xc18   :  { %v747_v2 = vadd.f32 %v746_v0, %v3438_v12 }
 0xc1a   :  { %3107 = vtanh.f32 %v747_v2  ;;  %v2320_v6 = vmul.f32 -1.442695, %v747_v2 }
 0xc1c   :  { %3109 = vpow2.f32 %v2320_v6 }
 0xc24   :  { %v3108_v5 = vpop.eup %3107 }
 0xc25   :  { %757 = vrot.lane.b32.xlu0 %v3108_v5, %s3211_s21 }
 0xc26   :  { %v3110_v7 = vpop.eup %3109 }
 0xc27   :  { %v751_v8 = vadd.f32 1.0, %v3110_v7 }
 0xc29   :  { %3111 = vrcp.f32 %v751_v8 }
 0xc33   :  { %v3112_v9 = vpop.eup %3111 }
 0xc34   :  { %v755_v13 = vmul.f32 %v3112_v9, %v649_v47  ;;  %v894_v47 = vld [vmem:[#allocation2 + $0x18] sm:$0xf] }
 0xc35   :  { %v899_v50 = vsel %vm94_vm6, %v894_v47, %v897_v49  ;;  %v1162_v49 = vld [vmem:[%s3885_s4 + $0x40] sm:$0xff] }
 0xc97   :  { %v758_v10 = vpop.permute.xlu0 %757 }
 0xc98   :  { %v760_v11 = vmul.f32 %v3112_v9, %v758_v10 }
 0xc9a   :  { %762 = vrot.lane.b32.xlu1 %v760_v11, %s3212_s3 }
 0xd0c   :  { %v763_v14 = vpop.permute.xlu1 %762 }
 0xd0d   :  { %v765_v15 = vadd.f32 %v763_v14, %v755_v13  ;;  %v1011_v14 = vld [vmem:[#allocation3] sm:$0xf] }
 0xd0f   :  { %3113 = vtanh.f32 %v765_v15 }
 0xd19   :  { %v3114_v16 = vpop.eup %3113 }
 0xd1a   :  { %768 = vrot.lane.b32.xlu0 %v3114_v16, %s3211_s21  ;;  %v1013_v16 = vrot.slane %v1011_v14, 4  ;;  %v1132_v14 = vld [vmem:[#allocation5 + $0x10] sm:$0xff] }
 0xd8c   :  { %v769_v17 = vpop.permute.xlu0 %768 }
 0xd8d   :  { %v771_v18 = vmul.f32 %v3112_v9, %v769_v17 }
 0xd8f   :  { %784 = vrot.lane.b32.xlu0 %v771_v18, %s3211_s21  ;;  %773 = vrot.lane.b32.xlu1 %v771_v18, %s3212_s3 }
 0xe01   :  { %v785_v19 = vpop.permute.xlu0 %784  ;;  %v774_v20 = vpop.permute.xlu1 %773 }
 0xe02   :  { %776 = vst.msk [vmem:[#allocation4 + $0x10] sm:$0xf] %vm309_vm9, %v774_v20  ;;  %v787_v21 = vsel %vm322_vm11, %v774_v20, %v785_v19 }
 0xe03   :  { %777 = vst.msk [vmem:[#allocation5 + $0x8] sm:$0xf0] %vm311_vm10, %v774_v20  ;;  %v788_v22 = vmul.f32 %v3377_v53, %v787_v21 }
 0xe05   :  { %2614 = vmatmul.mubr.msk.f32.vlgmr.msra.gmra.mrb[6].mxu1 %vm205_vm7, %v788_v22 }
 0xe06   :  { %2935 = vmatpush3.bf16.msra.mxu1 %v3330_v33  ;;  %2651 = vmatprep.mubr.msk.f32.mxu1 %vm3209_vm0, %v3207_v3  ;;  %v778_v33 = vld [vmem:[#allocation2 + $0x14] sm:$0xf] }
 0xe07   :  { %2936 = vmatprep.subr.bf16.mxu1 %v3208_v4  ;;  %v783_v25 = vsel %vm94_vm6, %v778_v33, %v781_v24 }
 0xe0a   :  { %2938 = vmatpush3.bf16.msra.mxu1 %v3345_v40 }
 0xe0b   :  { %2939 = vmatprep.subr.bf16.mxu1 %v3208_v4 }
 0xe0e   :  { %2941 = vmatpush3.bf16.msra.mxu1 %v3364_v48 }
 0xe0f   :  { %2942 = vmatprep.subr.bf16.mxu1 %v3208_v4 }
 0xe12   :  { %2944 = vmatpush3.bf16.msra.mxu1 %v3374_v52 }
 0xe13   :  { %2961 = vmatprep.subr.bf16.mxu1 %v3208_v4 }
 0xed8   :  { %v858_v26 = vpop.f32.mrb[6].mxu1 }
 0xed9   :  { %v862_v27 = vadd.f32 %v858_v26, %v783_v25  ;;  %v2615_v28 = vpop.f32.mrb[7].mxu1 }
 0xedb   :  { %v863_v40 = vadd.f32 %v862_v27, %v3438_v12 }
 0xedd   :  { %3115 = vtanh.f32 %v863_v40  ;;  %v2322_v48 = vmul.f32 -1.442695, %v863_v40 }
 0xedf   :  { %3117 = vpow2.f32 %v2322_v48 }
 0xee7   :  { %v3116_v29 = vpop.eup %3115 }
 0xee8   :  { %873 = vrot.lane.b32.xlu1 %v3116_v29, %s3211_s21 }
 0xee9   :  { %v3118_v30 = vpop.eup %3117 }
 0xeea   :  { %v867_v52 = vadd.f32 1.0, %v3118_v30 }
 0xeec   :  { %3119 = vrcp.f32 %v867_v52  ;;  %v1155_v52 = vld [vmem:[%s3885_s4 + $0x8] sm:$0xff] }
 0xef6   :  { %v3120_v31 = vpop.eup %3119 }
 0xef7   :  { %v871_v35 = vmul.f32 %v3120_v31, %v765_v15  ;;  %v1010_v15 = vld [vmem:[#allocation2 + $0x1c] sm:$0xf] }
 0xef8   :  { %v1015_v17 = vsel %vm94_vm6, %v1010_v15, %v1013_v16  ;;  %v1126_v16 = vld [vmem:[#allocation4] sm:$0xff] }
 0xf5a   :  { %v874_v32 = vpop.permute.xlu1 %873 }
 0xf5b   :  { %v876_v34 = vmul.f32 %v3120_v31, %v874_v32  ;;  %v1154_v32 = vld [vmem:[%s3885_s4] sm:$0xff] }
 0xf5d   :  { %878 = vrot.lane.b32.xlu0 %v876_v34, %s3212_s3 }
 0xfcf   :  { %v879_v36 = vpop.permute.xlu0 %878 }
 0xfd0   :  { %v881_v37 = vadd.f32 %v879_v36, %v871_v35  ;;  %v1156_v35 = vld [vmem:[%s3885_s4 + $0x10] sm:$0xff]  ;;  %v1159_v36 = vld [vmem:[%s3885_s4 + $0x28] sm:$0xff] }
 0xfd2   :  { %3121 = vtanh.f32 %v881_v37 }
 0xfdc   :  { %v3122_v38 = vpop.eup %3121 }
 0xfdd   :  { %884 = vrot.lane.b32.xlu1 %v3122_v38, %s3211_s21  ;;  %v2947_v38 = vpack.c.bf16 %v1156_v35, %v1154_v32 }
0x104f   :  { %v885_v39 = vpop.permute.xlu1 %884 }
0x1050   :  { %v887_v41 = vmul.f32 %v3120_v31, %v885_v39  ;;  %v1157_v31 = vld [vmem:[%s3885_s4 + $0x18] sm:$0xff] }
0x1051   :  { %v2945_v34 = vpack.c.bf16 %v1157_v31, %v1155_v52 }
0x1052   :  { %900 = vrot.lane.b32.xlu1 %v887_v41, %s3211_s21  ;;  %889 = vrot.lane.b32.xlu0 %v887_v41, %s3212_s3  ;;  %v1158_v41 = vld [vmem:[%s3885_s4 + $0x20] sm:$0xff] }
0x1053   :  { %2946 = vmatprep.subr.bf16.mxu0 %v2945_v34 }
0x10c4   :  { %v901_v42 = vpop.permute.xlu1 %900  ;;  %v890_v43 = vpop.permute.xlu0 %889 }
0x10c5   :  { %892 = vst.msk [vmem:[#allocation4 + $0x14] sm:$0xf] %vm309_vm9, %v890_v43  ;;  %v903_v44 = vsel %vm322_vm11, %v890_v43, %v901_v42  ;;  %v1160_v42 = vld [vmem:[%s3885_s4 + $0x30] sm:$0xff] }
0x10c6   :  { %893 = vst.msk [vmem:[#allocation5 + $0x4] sm:$0xf0] %vm311_vm10, %v890_v43  ;;  %v904_v45 = vmul.f32 %v3377_v53, %v903_v44  ;;  %v1163_v43 = vld [vmem:[%s3885_s4 + $0x48] sm:$0xff]  ;;  %v2951_v46 = vpack.c.bf16 %v1160_v42, %v1158_v41 }
0x10c8   :  { %2633 = vmatmul.mubr.msk.f32.vlgmr.msra.gmra.mrb[12].mxu0 %vm205_vm7, %v904_v45  ;;  %v1165_v45 = vld [vmem:[%s3885_s4 + $0x58] sm:$0xff] }
0x10c9   :  { %1255 = vmatprep.mubr.f32.mxu0 %v3207_v3  ;;  %2948 = vmatpush1.bf16.msra.mxu0 %v2947_v38  ;;  %v2953_v47 = vpack.c.bf16 %v1165_v45, %v1163_v43 }
0x10cd   :  { %v1131_v44 = vld [vmem:[#allocation5 + $0x8] sm:$0xff] }
0x119b   :  { %v974_v51 = vpop.f32.mrb[12].mxu0 }
0x119c   :  { %v978_v54 = vadd.f32 %v974_v51, %v899_v50  ;;  %v2634_v56 = vpop.f32.mrb[13].mxu0  ;;  %v1164_v50 = vld [vmem:[%s3885_s4 + $0x50] sm:$0xff]  ;;  %v1167_v51 = vld [vmem:[%s3885_s4 + $0x68] sm:$0xff] }
0x119d   :  { %v1133_v56 = vld [vmem:[#allocation5 + $0x18] sm:$0xff] }
0x119e   :  { %v979_v57 = vadd.f32 %v978_v54, %v3438_v12  ;;  %v1169_v54 = vld [vmem:[%s3885_s4 + $0x78] sm:$0xff] }
0x11a0   :  { %3123 = vtanh.f32 %v979_v57  ;;  %v2324_v59 = vmul.f32 -1.442695, %v979_v57  ;;  %v2955_v57 = vpack.c.bf16 %v1164_v50, %v1162_v49 }
0x11a2   :  { %3125 = vpow2.f32 %v2324_v59  ;;  %v1166_v59 = vld [vmem:[%s3885_s4 + $0x60] sm:$0xff] }
0x11aa   :  { %v3124_v58 = vpop.eup %3123 }
0x11ab   :  { %989 = vrot.lane.b32.xlu0 %v3124_v58, %s3211_s21  ;;  %v2957_v58 = vpack.c.bf16 %v1169_v54, %v1167_v51 }
0x11ac   :  { %v3126_v60 = vpop.eup %3125 }
0x11ad   :  { %v983_v61 = vadd.f32 1.0, %v3126_v60  ;;  %v1168_v60 = vld [vmem:[%s3885_s4 + $0x70] sm:$0xff] }
0x11af   :  { %3127 = vrcp.f32 %v983_v61  ;;  %v2959_v61 = vpack.c.bf16 %v1168_v60, %v1166_v59 }
0x11b9   :  { %v3128_v62 = vpop.eup %3127 }
0x11ba   :  { %v987_v1 = vmul.f32 %v3128_v62, %v881_v37  ;;  %v1161_v37 = vld [vmem:[%s3885_s4 + $0x38] sm:$0xff] }
0x11bb   :  { %v2949_v39 = vpack.c.bf16 %v1161_v37, %v1159_v36  ;;  %v3713_v36 = vld [vmem:[%s3887_s6] sm:$0xff] }
0x11bd   :  { %2950 = vmatprep.subr.bf16.mxu0 %v2949_v39 }
0x11be   :  { %2952 = vmatpush1.bf16.msra.mxu0 %v2951_v46 }
0x11bf   :  { %2954 = vmatprep.subr.bf16.mxu0 %v2953_v47 }
0x11c2   :  { %2956 = vmatpush1.bf16.msra.mxu0 %v2955_v57 }
0x11c3   :  { %2958 = vmatprep.subr.bf16.mxu0 %v2957_v58 }
0x11c6   :  { %2960 = vmatpush1.bf16.msra.mxu0 %v2959_v61 }
0x11c7   :  { %2973 = vmatprep.subr.bf16.mxu0 %v3208_v4 }
0x121d   :  { %v990_v63 = vpop.permute.xlu0 %989 }
0x121e   :  { %v992_v0 = vmul.f32 %v3128_v62, %v990_v63  ;;  %v1170_v63 = vld [vmem:[%s3886_s5] sm:$0xff] }
0x1220   :  { %994 = vrot.lane.b32.xlu1 %v992_v0, %s3212_s3  ;;  %v1171_v0 = vld [vmem:[%s3886_s5 + $0x8] sm:$0xff] }
0x1292   :  { %v995_v2 = vpop.permute.xlu1 %994 }
0x1293   :  { %v997_v5 = vadd.f32 %v995_v2, %v987_v1  ;;  %v3641_v1 = vpack.c.bf16 %v1171_v0, %v1170_v63  ;;  %v1172_v2 = vld [vmem:[%s3886_s5 + $0x10] sm:$0xff] }
0x1295   :  { %3129 = vtanh.f32 %v997_v5 }
0x129f   :  { %v3130_v6 = vpop.eup %3129 }
0x12a0   :  { %1000 = vrot.lane.b32.xlu0 %v3130_v6, %s3211_s21 }
0x1312   :  { %v1001_v7 = vpop.permute.xlu0 %1000 }
0x1313   :  { %v1003_v8 = vmul.f32 %v3128_v62, %v1001_v7 }
0x1315   :  { %1016 = vrot.lane.b32.xlu0 %v1003_v8, %s3211_s21  ;;  %1005 = vrot.lane.b32.xlu1 %v1003_v8, %s3212_s3  ;;  %v1174_v8 = vld [vmem:[%s3886_s5 + $0x20] sm:$0xff] }
0x1387   :  { %v1017_v9 = vpop.permute.xlu0 %1016  ;;  %v1006_v10 = vpop.permute.xlu1 %1005 }
0x1388   :  { %1008 = vst.msk [vmem:[#allocation4 + $0x18] sm:$0xf] %vm309_vm9, %v1006_v10  ;;  %v1019_v11 = vsel %vm322_vm11, %v1006_v10, %v1017_v9  ;;  %v1175_v9 = vld [vmem:[%s3886_s5 + $0x28] sm:$0xff] }
0x1389   :  { %1009 = vst.msk [vmem:[#allocation5] sm:$0xf0] %vm311_vm10, %v1006_v10  ;;  %v1020_v13 = vmul.f32 %v3377_v53, %v1019_v11  ;;  %v3662_v10 = vpack.c.bf16 %v1175_v9, %v1174_v8  ;;  %v1176_v11 = vld [vmem:[%s3886_s5 + $0x30] sm:$0xff] }
0x138b   :  { %2652 = vmatmul.mubr.msk.f32.vlgmr.msra.gmra.mrb[8].mxu1 %vm205_vm7, %v1020_v13  ;;  %v1177_v13 = vld [vmem:[%s3886_s5 + $0x38] sm:$0xff] }
0x138c   :  { %2670 = vmatprep.mubr.msk.f32.mxu1 %vm3209_vm0, %v3207_v3  ;;  %2963 = vmatpush3.bf16.msra.mxu1 %v3641_v1  ;;  %v3672_v15 = vpack.c.bf16 %v1177_v13, %v1176_v11 }
0x138d   :  { %2964 = vmatprep.subr.bf16.mxu1 %v3208_v4 }
0x145e   :  { %v1090_v18 = vpop.f32.mrb[8].mxu1 }
0x145f   :  { %v1094_v19 = vadd.f32 %v1090_v18, %v1015_v17  ;;  %v2653_v20 = vpop.f32.mrb[9].mxu1 }
0x1461   :  { %v1095_v21 = vadd.f32 %v1094_v19, %v3438_v12  ;;  %v1127_v19 = vld [vmem:[#allocation4 + $0x8] sm:$0xff] }
0x1463   :  { %3131 = vtanh.f32 %v1095_v21  ;;  %v2326_v23 = vmul.f32 -1.442695, %v1095_v21 }
0x1465   :  { %3133 = vpow2.f32 %v2326_v23 }
0x146d   :  { %v3132_v22 = vpop.eup %3131 }
0x146e   :  { %1105 = vrot.lane.b32.xlu1 %v3132_v22, %s3211_s21  ;;  %v1128_v22 = vld [vmem:[#allocation4 + $0x10] sm:$0xff] }
0x146f   :  { %v3134_v24 = vpop.eup %3133 }
0x1470   :  { %v1099_v33 = vadd.f32 1.0, %v3134_v24 }
0x1472   :  { %3135 = vrcp.f32 %v1099_v33 }
0x147c   :  { %v3136_v25 = vpop.eup %3135 }
0x147d   :  { %v1103_v28 = vmul.f32 %v3136_v25, %v997_v5  ;;  %v1173_v5 = vld [vmem:[%s3886_s5 + $0x18] sm:$0xff] }
0x147e   :  { %v3651_v6 = vpack.c.bf16 %v1173_v5, %v1172_v2 }
0x1480   :  { %2966 = vmatpush3.bf16.msra.mxu1 %v3651_v6 }
0x1481   :  { %2967 = vmatprep.subr.bf16.mxu1 %v3208_v4 }
0x1484   :  { %2969 = vmatpush3.bf16.msra.mxu1 %v3662_v10 }
0x1485   :  { %2970 = vmatprep.subr.bf16.mxu1 %v3208_v4 }
0x1488   :  { %2972 = vmatpush3.bf16.msra.mxu1 %v3672_v15 }
0x1489   :  { %2985 = vmatprep.subr.bf16.mxu1 %v3208_v4 }
0x148b   :  { %2671 = vmatmul.mubr.msk.f32.vlgmr.msra.gmra.mrb[10].mxu1 %vm205_vm7, %v3384_v55 }
0x148c   :  { %2987 = vmatpush3.bf16.msra.mxu1 %v3641_v1  ;;  %2708 = vmatprep.mubr.msk.f32.mxu1 %vm3209_vm0, %v3207_v3 }
0x148d   :  { %2988 = vmatprep.subr.bf16.mxu1 %v3208_v4 }
0x1490   :  { %2990 = vmatpush3.bf16.msra.mxu1 %v3651_v6 }
0x1491   :  { %2991 = vmatprep.subr.bf16.mxu1 %v3208_v4 }
0x1494   :  { %2993 = vmatpush3.bf16.msra.mxu1 %v3662_v10 }
0x1495   :  { %2994 = vmatprep.subr.bf16.mxu1 %v3208_v4 }
0x1498   :  { %2996 = vmatpush3.bf16.msra.mxu1 %v3672_v15 }
0x1499   :  { %3009 = vmatprep.subr.bf16.mxu1 %v3208_v4 }
0x14e0   :  { %v1106_v26 = vpop.permute.xlu1 %1105 }
0x14e1   :  { %v1108_v27 = vmul.f32 %v3136_v25, %v1106_v26 }
0x14e3   :  { %1110 = vrot.lane.b32.xlu0 %v1108_v27, %s3212_s3 }
0x1555   :  { %v1111_v40 = vpop.permute.xlu0 %1110 }
0x1556   :  { %v1113_v29 = vadd.f32 %v1111_v40, %v1103_v28 }
0x1558   :  { %3137 = vtanh.f32 %v1113_v29 }
0x155e   :  { %v1360_v26 = vpop.f32.mrb[10].mxu1 }
0x155f   :  { %v2672_v27 = vpop.f32.mrb[11].mxu1 }
0x1562   :  { %v3138_v48 = vpop.eup %3137 }
0x1563   :  { %1116 = vrot.lane.b32.xlu1 %v3138_v48, %s3211_s21 }
0x15d5   :  { %v1117_v12 = vpop.permute.xlu1 %1116 }
0x15d6   :  { %v1119_v30 = vmul.f32 %v3136_v25, %v1117_v12 }
0x15d8   :  { %1121 = vrot.lane.b32.xlu0 %v1119_v30, %s3212_s3 }
0x15dc   :  { %1140 = vrot.lane.b32.xlu0 %v1131_v44, %s3212_s3 }
0x15e0   :  { %1144 = vrot.lane.b32.xlu0 %v1133_v56, %s3212_s3 }
0x164a   :  { %v1122_v62 = vpop.permute.xlu0 %1121 }
0x164b   :  { %1124 = vst.msk [vmem:[#allocation4 + $0x1c] sm:$0xf] %vm309_vm9, %v1122_v62 }
0x164c   :  { %1125 = vst.msk [vmem:[#allocation5 - $0x4] sm:$0xf0] %vm311_vm10, %v1122_v62 }
0x164e   :  { %v1141_v18 = vpop.permute.xlu0 %1140 }
0x164f   :  { %v1151_v20 = vsel %vm322_vm11, %v1127_v19, %v1141_v18 }
0x1652   :  { %v1129_v24 = vld [vmem:[#allocation4 + $0x18] sm:$0xff]  ;;  %v1145_v33 = vpop.permute.xlu0 %1144 }
0x1653   :  { %v1130_v7 = vld [vmem:[#allocation5] sm:$0xff]  ;;  %v1153_v25 = vsel %vm322_vm11, %v1129_v24, %v1145_v33 }
0x1654   :  { %1138 = vrot.lane.b32.xlu1 %v1130_v7, %s3212_s3 }
0x1658   :  { %1142 = vrot.lane.b32.xlu1 %v1132_v14, %s3212_s3 }
0x16c6   :  { %v1139_v55 = vpop.permute.xlu1 %1138 }
0x16c7   :  { %v1150_v17 = vsel %vm322_vm11, %v1126_v16, %v1139_v55 }
0x16c8   :  { %2327 = vmatmul.mubr.msk.f32.vlgmr.msra.gmra.mrb[14].mxu0 %vm205_vm7, %v1150_v17 }
0x16c9   :  { %1261 = vmatprep.mubr.f32.mxu0 %v3207_v3  ;;  %2975 = vmatpush3.bf16.msra.mxu0 %v3641_v1 }
0x16ca   :  { %2976 = vmatprep.subr.bf16.mxu0 %v3208_v4  ;;  %v1143_v21 = vpop.permute.xlu1 %1142 }
0x16cb   :  { %v1152_v23 = vsel %vm322_vm11, %v1128_v22, %v1143_v21 }
0x16cc   :  { %2328 = vmatmul.mubr.msk.f32.gmra.mrb[16].mxu0 %vm205_vm7, %v1151_v20 }
0x16cd   :  { %1267 = vmatprep.mubr.f32.mxu0 %v3207_v3  ;;  %2978 = vmatpush3.bf16.msra.mxu0 %v3651_v6 }
0x16ce   :  { %2979 = vmatprep.subr.bf16.mxu0 %v3208_v4 }
0x16d0   :  { %2329 = vmatmul.mubr.msk.f32.gmra.mrb[18].mxu0 %vm205_vm7, %v1152_v23 }
0x16d1   :  { %1273 = vmatprep.mubr.f32.mxu0 %v3207_v3  ;;  %2981 = vmatpush3.bf16.msra.mxu0 %v3662_v10 }
0x16d2   :  { %2982 = vmatprep.subr.bf16.mxu0 %v3208_v4 }
0x16d4   :  { %2330 = vmatmul.mubr.msk.f32.gmra.mrb[20].mxu0 %vm205_vm7, %v1153_v25 }
0x16d5   :  { %2984 = vmatpush3.bf16.msra.mxu0 %v3672_v15  ;;  %2689 = vmatprep.mubr.msk.f32.mxu0 %vm3209_vm0, %v3207_v3 }
0x16d6   :  { %2997 = vmatprep.subr.bf16.mxu0 %v3208_v4 }
0x179b   :  { %v1257_v28 = vpop.f32.mrb[14].mxu0 }
0x179c   :  { %1280 = vst [vmem:[#allocation2] sm:$0xff] %v1257_v28  ;;  %v1259_v40 = vpop.f32.mrb[15].mxu0 }
0x179d   :  { %1284 = vst [vmem:[#allocation3] sm:$0xff] %v1259_v40 }
0x179f   :  { %v1263_v29 = vpop.f32.mrb[16].mxu0 }
0x17a0   :  { %1281 = vst [vmem:[#allocation2 + $0x8] sm:$0xff] %v1263_v29  ;;  %v1265_v48 = vpop.f32.mrb[17].mxu0 }
0x17a1   :  { %1285 = vst [vmem:[#allocation3 + $0x8] sm:$0xff] %v1265_v48 }
0x17a3   :  { %v1269_v12 = vpop.f32.mrb[18].mxu0  ;;  %v1288_v35 = vld [vmem:[#allocation2] sm:$0xf]  ;;  %v1390_v0 = vld [vmem:[#allocation2 + $0x4] sm:$0xf] }
0x17a4   :  { %1282 = vst [vmem:[#allocation2 + $0x10] sm:$0xff] %v1269_v12  ;;  %v1271_v30 = vpop.f32.mrb[19].mxu0 }
0x17a5   :  { %1286 = vst [vmem:[#allocation3 + $0x10] sm:$0xff] %v1271_v30 }
0x17a7   :  { %v1275_v52 = vpop.f32.mrb[20].mxu0  ;;  %v1504_v29 = vld [vmem:[#allocation2 + $0x8] sm:$0xf] }
0x17a8   :  { %1283 = vst [vmem:[#allocation2 + $0x18] sm:$0xff] %v1275_v52  ;;  %v1277_v31 = vpop.f32.mrb[21].mxu0 }
0x17a9   :  { %1287 = vst [vmem:[#allocation3 + $0x18] sm:$0xff] %v1277_v31 }
0x17ac   :  { %v1505_v28 = vld [vmem:[#allocation3 + $0x14] sm:$0xf] }
0x17ad   :  { %v1507_v40 = vrot.slane %v1505_v28, 4 }
0x17af   :  { %v1509_v48 = vsel %vm94_vm6, %v1504_v29, %v1507_v40 }
0x17b0   :  { %v1289_v32 = vld [vmem:[#allocation3 + $0x1c] sm:$0xf]  ;;  %v1391_v62 = vld [vmem:[#allocation3 + $0x18] sm:$0xf] }
0x17b1   :  { %v1291_v34 = vrot.slane %v1289_v32, 4  ;;  %v1393_v63 = vrot.slane %v1391_v62, 4 }
0x17b3   :  { %v1293_v37 = vsel %vm94_vm6, %v1288_v35, %v1291_v34  ;;  %v1395_v2 = vsel %vm94_vm6, %v1390_v0, %v1393_v63 }
0x17b4   :  { %v1364_v38 = vadd.f32 %v1360_v26, %v1293_v37 }
0x17b6   :  { %v1365_v39 = vadd.f32 %v1364_v38, %v3713_v36 }
0x17b8   :  { %3139 = vtanh.f32 %v1365_v39  ;;  %v2332_v42 = vmul.f32 -1.442695, %v1365_v39 }
0x17ba   :  { %3141 = vpow2.f32 %v2332_v42 }
0x17c2   :  { %v3140_v41 = vpop.eup %3139 }
0x17c3   :  { %1375 = vrot.lane.b32.xlu1 %v3140_v41, %s3211_s21 }
0x17c4   :  { %v3142_v43 = vpop.eup %3141 }
0x17c5   :  { %v1369_v44 = vadd.f32 1.0, %v3142_v43 }
0x17c7   :  { %3143 = vrcp.f32 %v1369_v44 }
0x17d1   :  { %v3144_v45 = vpop.eup %3143 }
0x17d2   :  { %v1373_v49 = vmul.f32 0.0, %v3144_v45 }
0x1835   :  { %v1376_v46 = vpop.permute.xlu1 %1375 }
0x1836   :  { %v1378_v47 = vmul.f32 %v3144_v45, %v1376_v46 }
0x1838   :  { %1380 = vrot.lane.b32.xlu0 %v1378_v47, %s3212_s3 }
0x18aa   :  { %v1381_v50 = vpop.permute.xlu0 %1380 }
0x18ab   :  { %v1383_v51 = vadd.f32 %v1381_v50, %v1373_v49 }
0x18ad   :  { %3145 = vtanh.f32 %v1383_v51 }
0x18b7   :  { %v3146_v54 = vpop.eup %3145 }
0x18b8   :  { %1386 = vrot.lane.b32.xlu1 %v3146_v54, %s3211_s21 }
0x192a   :  { %v1387_v56 = vpop.permute.xlu1 %1386 }
0x192b   :  { %v1389_v57 = vmul.f32 %v3144_v45, %v1387_v56  ;;  %v1619_v56 = vld [vmem:[#allocation3 + $0x10] sm:$0xf] }
0x192d   :  { %1400 = vrot.lane.b32.xlu1 %v1389_v57, %s3211_s21  ;;  %1397 = vrot.lane.b32.xlu0 %v1389_v57, %s3212_s3  ;;  %v1621_v57 = vrot.slane %v1619_v56, 4 }
0x199f   :  { %v1401_v58 = vpop.permute.xlu1 %1400  ;;  %v1398_v59 = vpop.permute.xlu0 %1397 }
0x19a0   :  { %v1403_v60 = vsel %vm322_vm11, %v1398_v59, %v1401_v58  ;;  %v1618_v58 = vld [vmem:[#allocation2 + $0xc] sm:$0xf] }
0x19a1   :  { %v1404_v61 = vmul.f32 %v3377_v53, %v1403_v60  ;;  %v1623_v59 = vsel %vm94_vm6, %v1618_v58, %v1621_v57 }
0x19a3   :  { %2690 = vmatmul.mubr.msk.f32.vlgmr.msra.gmra.mrb[22].mxu0 %vm205_vm7, %v1404_v61 }
0x19a4   :  { %2999 = vmatpush3.bf16.msra.mxu0 %v3641_v1  ;;  %2727 = vmatprep.mubr.msk.f32.mxu0 %vm3209_vm0, %v3207_v3 }
0x19a5   :  { %3000 = vmatprep.subr.bf16.mxu0 %v3208_v4 }
0x19a8   :  { %3002 = vmatpush3.bf16.msra.mxu0 %v3651_v6 }
0x19a9   :  { %3003 = vmatprep.subr.bf16.mxu0 %v3208_v4 }
0x19ac   :  { %3005 = vmatpush3.bf16.msra.mxu0 %v3662_v10 }
0x19ad   :  { %3006 = vmatprep.subr.bf16.mxu0 %v3208_v4 }
0x19b0   :  { %3008 = vmatpush3.bf16.msra.mxu0 %v3672_v15 }
0x19b1   :  { %3021 = vmatprep.subr.bf16.mxu0 %v3208_v4 }
0x1a76   :  { %v1474_v5 = vpop.f32.mrb[22].mxu0 }
0x1a77   :  { %v1478_v7 = vadd.f32 %v1474_v5, %v1395_v2  ;;  %v2691_v8 = vpop.f32.mrb[23].mxu0 }
0x1a79   :  { %v1479_v9 = vadd.f32 %v1478_v7, %v3713_v36 }
0x1a7b   :  { %3147 = vtanh.f32 %v1479_v9  ;;  %v2334_v13 = vmul.f32 -1.442695, %v1479_v9 }
0x1a7d   :  { %3149 = vpow2.f32 %v2334_v13 }
0x1a85   :  { %v3148_v11 = vpop.eup %3147 }
0x1a86   :  { %1489 = vrot.lane.b32.xlu0 %v3148_v11, %s3211_s21 }
0x1a87   :  { %v3150_v14 = vpop.eup %3149 }
0x1a88   :  { %v1483_v55 = vadd.f32 1.0, %v3150_v14 }
0x1a8a   :  { %3151 = vrcp.f32 %v1483_v55 }
0x1a94   :  { %v3152_v16 = vpop.eup %3151 }
0x1a95   :  { %v1487_v19 = vmul.f32 %v3152_v16, %v1383_v51 }
0x1af8   :  { %v1490_v17 = vpop.permute.xlu0 %1489 }
0x1af9   :  { %v1492_v18 = vmul.f32 %v3152_v16, %v1490_v17 }
0x1afb   :  { %1494 = vrot.lane.b32.xlu1 %v1492_v18, %s3212_s3 }
0x1b6d   :  { %v1495_v20 = vpop.permute.xlu1 %1494 }
0x1b6e   :  { %v1497_v21 = vadd.f32 %v1495_v20, %v1487_v19 }
0x1b70   :  { %3153 = vtanh.f32 %v1497_v21 }
0x1b7a   :  { %v3154_v22 = vpop.eup %3153 }
0x1b7b   :  { %1500 = vrot.lane.b32.xlu0 %v3154_v22, %s3211_s21 }
0x1bed   :  { %v1501_v23 = vpop.permute.xlu0 %1500 }
0x1bee   :  { %v1503_v24 = vmul.f32 %v3152_v16, %v1501_v23  ;;  %v1733_v23 = vld [vmem:[#allocation3 + $0xc] sm:$0xf] }
0x1bf0   :  { %1514 = vrot.lane.b32.xlu0 %v1503_v24, %s3211_s21  ;;  %1511 = vrot.lane.b32.xlu1 %v1503_v24, %s3212_s3  ;;  %v1735_v24 = vrot.slane %v1733_v23, 4 }
0x1c62   :  { %v1515_v33 = vpop.permute.xlu0 %1514  ;;  %v1512_v25 = vpop.permute.xlu1 %1511 }
0x1c63   :  { %v1517_v26 = vsel %vm322_vm11, %v1512_v25, %v1515_v33  ;;  %v1732_v33 = vld [vmem:[#allocation2 + $0x10] sm:$0xf] }
0x1c64   :  { %v1518_v27 = vmul.f32 %v3377_v53, %v1517_v26  ;;  %v1737_v25 = vsel %vm94_vm6, %v1732_v33, %v1735_v24 }
0x1c66   :  { %2709 = vmatmul.mubr.msk.f32.vlgmr.msra.gmra.mrb[12].mxu1 %vm205_vm7, %v1518_v27 }
0x1c67   :  { %3011 = vmatpush3.bf16.msra.mxu1 %v3641_v1  ;;  %2746 = vmatprep.mubr.msk.f32.mxu1 %vm3209_vm0, %v3207_v3 }
0x1c68   :  { %3012 = vmatprep.subr.bf16.mxu1 %v3208_v4 }
0x1c6b   :  { %3014 = vmatpush3.bf16.msra.mxu1 %v3651_v6 }
0x1c6c   :  { %3015 = vmatprep.subr.bf16.mxu1 %v3208_v4 }
0x1c6f   :  { %3017 = vmatpush3.bf16.msra.mxu1 %v3662_v10 }
0x1c70   :  { %3018 = vmatprep.subr.bf16.mxu1 %v3208_v4 }
0x1c73   :  { %3020 = vmatpush3.bf16.msra.mxu1 %v3672_v15 }
0x1c74   :  { %3033 = vmatprep.subr.bf16.mxu1 %v3208_v4 }
0x1d39   :  { %v1588_v12 = vpop.f32.mrb[12].mxu1 }
0x1d3a   :  { %v1592_v30 = vadd.f32 %v1588_v12, %v1509_v48  ;;  %v2710_v52 = vpop.f32.mrb[13].mxu1 }
0x1d3c   :  { %v1593_v31 = vadd.f32 %v1592_v30, %v3713_v36 }
0x1d3e   :  { %3155 = vtanh.f32 %v1593_v31  ;;  %v2336_v34 = vmul.f32 -1.442695, %v1593_v31 }
0x1d40   :  { %3157 = vpow2.f32 %v2336_v34 }
0x1d48   :  { %v3156_v32 = vpop.eup %3155 }
0x1d49   :  { %1603 = vrot.lane.b32.xlu1 %v3156_v32, %s3211_s21 }
0x1d4a   :  { %v3158_v35 = vpop.eup %3157 }
0x1d4b   :  { %v1597_v37 = vadd.f32 1.0, %v3158_v35 }
0x1d4d   :  { %3159 = vrcp.f32 %v1597_v37 }
0x1d57   :  { %v3160_v38 = vpop.eup %3159 }
0x1d58   :  { %v1601_v42 = vmul.f32 %v3160_v38, %v1497_v21 }
0x1dbb   :  { %v1604_v39 = vpop.permute.xlu1 %1603 }
0x1dbc   :  { %v1606_v41 = vmul.f32 %v3160_v38, %v1604_v39 }
0x1dbe   :  { %1608 = vrot.lane.b32.xlu0 %v1606_v41, %s3212_s3 }
0x1e30   :  { %v1609_v43 = vpop.permute.xlu0 %1608 }
0x1e31   :  { %v1611_v44 = vadd.f32 %v1609_v43, %v1601_v42 }
0x1e33   :  { %3161 = vtanh.f32 %v1611_v44 }
0x1e3d   :  { %v3162_v45 = vpop.eup %3161 }
0x1e3e   :  { %1614 = vrot.lane.b32.xlu1 %v3162_v45, %s3211_s21 }
0x1eb0   :  { %v1615_v46 = vpop.permute.xlu1 %1614 }
0x1eb1   :  { %v1617_v47 = vmul.f32 %v3160_v38, %v1615_v46  ;;  %v1847_v46 = vld [vmem:[#allocation3 + $0x8] sm:$0xf] }
0x1eb3   :  { %1628 = vrot.lane.b32.xlu1 %v1617_v47, %s3211_s21  ;;  %1625 = vrot.lane.b32.xlu0 %v1617_v47, %s3212_s3  ;;  %v1849_v47 = vrot.slane %v1847_v46, 4 }
0x1f25   :  { %v1629_v49 = vpop.permute.xlu1 %1628  ;;  %v1626_v50 = vpop.permute.xlu0 %1625 }
0x1f26   :  { %v1631_v51 = vsel %vm322_vm11, %v1626_v50, %v1629_v49  ;;  %v1846_v49 = vld [vmem:[#allocation2 + $0x14] sm:$0xf] }
0x1f27   :  { %v1632_v54 = vmul.f32 %v3377_v53, %v1631_v51 }
0x1f29   :  { %2728 = vmatmul.mubr.msk.f32.vlgmr.msra.gmra.mrb[24].mxu0 %vm205_vm7, %v1632_v54 }
0x1f2a   :  { %3023 = vmatpush3.bf16.msra.mxu0 %v3641_v1  ;;  %2765 = vmatprep.mubr.msk.f32.mxu0 %vm3209_vm0, %v3207_v3 }
0x1f2b   :  { %3024 = vmatprep.subr.bf16.mxu0 %v3208_v4 }
0x1f2e   :  { %3026 = vmatpush3.bf16.msra.mxu0 %v3651_v6 }
0x1f2f   :  { %3027 = vmatprep.subr.bf16.mxu0 %v3208_v4 }
0x1f32   :  { %3029 = vmatpush3.bf16.msra.mxu0 %v3662_v10 }
0x1f33   :  { %3030 = vmatprep.subr.bf16.mxu0 %v3208_v4 }
0x1f36   :  { %3032 = vmatpush3.bf16.msra.mxu0 %v3672_v15 }
0x1f37   :  { %3045 = vmatprep.subr.bf16.mxu0 %v3208_v4 }
0x1ffc   :  { %v1702_v60 = vpop.f32.mrb[24].mxu0 }
0x1ffd   :  { %v1706_v61 = vadd.f32 %v1702_v60, %v1623_v59  ;;  %v2729_v62 = vpop.f32.mrb[25].mxu0 }
0x1fff   :  { %v1707_v63 = vadd.f32 %v1706_v61, %v3713_v36 }
0x2001   :  { %3163 = vtanh.f32 %v1707_v63  ;;  %v2338_v2 = vmul.f32 -1.442695, %v1707_v63 }
0x2003   :  { %3165 = vpow2.f32 %v2338_v2 }
0x200b   :  { %v3164_v0 = vpop.eup %3163 }
0x200c   :  { %1717 = vrot.lane.b32.xlu0 %v3164_v0, %s3211_s21 }
0x200d   :  { %v3166_v5 = vpop.eup %3165 }
0x200e   :  { %v1711_v7 = vadd.f32 1.0, %v3166_v5 }
0x2010   :  { %3167 = vrcp.f32 %v1711_v7 }
0x201a   :  { %v3168_v8 = vpop.eup %3167 }
0x201b   :  { %v1715_v13 = vmul.f32 %v3168_v8, %v1611_v44 }
0x207e   :  { %v1718_v9 = vpop.permute.xlu0 %1717 }
0x207f   :  { %v1720_v11 = vmul.f32 %v3168_v8, %v1718_v9 }
0x2081   :  { %1722 = vrot.lane.b32.xlu1 %v1720_v11, %s3212_s3 }
0x20f3   :  { %v1723_v14 = vpop.permute.xlu1 %1722 }
0x20f4   :  { %v1725_v55 = vadd.f32 %v1723_v14, %v1715_v13  ;;  %v1961_v13 = vld [vmem:[#allocation3 + $0x4] sm:$0xf]  ;;  %v1960_v14 = vld [vmem:[#allocation2 + $0x18] sm:$0xf] }
0x20f6   :  { %3169 = vtanh.f32 %v1725_v55 }
0x2100   :  { %v3170_v16 = vpop.eup %3169 }
0x2101   :  { %1728 = vrot.lane.b32.xlu0 %v3170_v16, %s3211_s21 }
0x2173   :  { %v1729_v17 = vpop.permute.xlu0 %1728 }
0x2174   :  { %v1731_v18 = vmul.f32 %v3168_v8, %v1729_v17 }
0x2176   :  { %1742 = vrot.lane.b32.xlu0 %v1731_v18, %s3211_s21  ;;  %1739 = vrot.lane.b32.xlu1 %v1731_v18, %s3212_s3 }
0x21e8   :  { %v1743_v19 = vpop.permute.xlu0 %1742  ;;  %v1740_v20 = vpop.permute.xlu1 %1739 }
0x21e9   :  { %v1745_v21 = vsel %vm322_vm11, %v1740_v20, %v1743_v19 }
0x21ea   :  { %v1746_v22 = vmul.f32 %v3377_v53, %v1745_v21 }
0x21ec   :  { %2747 = vmatmul.mubr.msk.f32.vlgmr.msra.gmra.mrb[14].mxu1 %vm205_vm7, %v1746_v22 }
0x21ed   :  { %3035 = vmatpush3.bf16.msra.mxu1 %v3641_v1  ;;  %2784 = vmatprep.mubr.msk.f32.mxu1 %vm3209_vm0, %v3207_v3 }
0x21ee   :  { %3036 = vmatprep.subr.bf16.mxu1 %v3208_v4 }
0x21f1   :  { %3038 = vmatpush3.bf16.msra.mxu1 %v3651_v6 }
0x21f2   :  { %3039 = vmatprep.subr.bf16.mxu1 %v3208_v4 }
0x21f5   :  { %3041 = vmatpush3.bf16.msra.mxu1 %v3662_v10 }
0x21f6   :  { %3042 = vmatprep.subr.bf16.mxu1 %v3208_v4 }
0x21f9   :  { %3044 = vmatpush3.bf16.msra.mxu1 %v3672_v15 }
0x21fa   :  { %3057 = vmatprep.subr.bf16.mxu1 %v3208_v4 }
0x22bf   :  { %v1816_v26 = vpop.f32.mrb[14].mxu1 }
0x22c0   :  { %v1820_v27 = vadd.f32 %v1816_v26, %v1737_v25  ;;  %v2748_v28 = vpop.f32.mrb[15].mxu1 }
0x22c2   :  { %v1821_v40 = vadd.f32 %v1820_v27, %v3713_v36 }
0x22c4   :  { %3171 = vtanh.f32 %v1821_v40  ;;  %v2340_v48 = vmul.f32 -1.442695, %v1821_v40 }
0x22c6   :  { %3173 = vpow2.f32 %v2340_v48 }
0x22ce   :  { %v3172_v29 = vpop.eup %3171 }
0x22cf   :  { %1831 = vrot.lane.b32.xlu1 %v3172_v29, %s3211_s21 }
0x22d0   :  { %v3174_v12 = vpop.eup %3173 }
0x22d1   :  { %v1825_v30 = vadd.f32 1.0, %v3174_v12 }
0x22d3   :  { %3175 = vrcp.f32 %v1825_v30 }
0x22dd   :  { %v3176_v52 = vpop.eup %3175 }
0x22de   :  { %v1829_v34 = vmul.f32 %v3176_v52, %v1725_v55  ;;  %v1963_v55 = vrot.slane %v1961_v13, 4 }
0x22e0   :  { %v1965_v16 = vsel %vm94_vm6, %v1960_v14, %v1963_v55 }
0x2341   :  { %v1832_v31 = vpop.permute.xlu1 %1831 }
0x2342   :  { %v1834_v32 = vmul.f32 %v3176_v52, %v1832_v31 }
0x2344   :  { %1836 = vrot.lane.b32.xlu0 %v1834_v32, %s3212_s3  ;;  %v2075_v32 = vld [vmem:[#allocation3] sm:$0xf] }
0x23b6   :  { %v1837_v35 = vpop.permute.xlu0 %1836 }
0x23b7   :  { %v1839_v37 = vadd.f32 %v1837_v35, %v1829_v34  ;;  %v2074_v34 = vld [vmem:[#allocation2 + $0x1c] sm:$0xf]  ;;  %v2077_v35 = vrot.slane %v2075_v32, 4 }
0x23b9   :  { %3177 = vtanh.f32 %v1839_v37 }
0x23c3   :  { %v3178_v38 = vpop.eup %3177 }
0x23c4   :  { %1842 = vrot.lane.b32.xlu1 %v3178_v38, %s3211_s21 }
0x2436   :  { %v1843_v39 = vpop.permute.xlu1 %1842 }
0x2437   :  { %v1845_v41 = vmul.f32 %v3176_v52, %v1843_v39 }
0x2439   :  { %1856 = vrot.lane.b32.xlu1 %v1845_v41, %s3211_s21  ;;  %1853 = vrot.lane.b32.xlu0 %v1845_v41, %s3212_s3 }
0x24ab   :  { %v1857_v42 = vpop.permute.xlu1 %1856  ;;  %v1854_v43 = vpop.permute.xlu0 %1853 }
0x24ac   :  { %v1859_v44 = vsel %vm322_vm11, %v1854_v43, %v1857_v42 }
0x24ad   :  { %v1860_v45 = vmul.f32 %v3377_v53, %v1859_v44 }
0x24af   :  { %2766 = vmatmul.mubr.msk.f32.vlgmr.msra.gmra.mrb[26].mxu0 %vm205_vm7, %v1860_v45 }
0x24b0   :  { %3047 = vmatpush3.bf16.msra.mxu0 %v3641_v1  ;;  %2803 = vmatprep.mubr.msk.f32.mxu0 %vm3209_vm0, %v3207_v3  ;;  %v1851_v1 = vsel %vm94_vm6, %v1846_v49, %v1849_v47 }
0x24b1   :  { %3048 = vmatprep.subr.bf16.mxu0 %v3208_v4 }
0x24b4   :  { %3050 = vmatpush3.bf16.msra.mxu0 %v3651_v6 }
0x24b5   :  { %3051 = vmatprep.subr.bf16.mxu0 %v3208_v4 }
0x24b8   :  { %3053 = vmatpush3.bf16.msra.mxu0 %v3662_v10 }
0x24b9   :  { %3054 = vmatprep.subr.bf16.mxu0 %v3208_v4 }
0x24bc   :  { %3056 = vmatpush3.bf16.msra.mxu0 %v3672_v15 }
0x2582   :  { %v1930_v50 = vpop.f32.mrb[26].mxu0 }
0x2583   :  { %v1934_v51 = vadd.f32 %v1930_v50, %v1851_v1  ;;  %v2767_v54 = vpop.f32.mrb[27].mxu0 }
0x2584   :  { %v2198_v54 = vld [vmem:[%s3888_s7 + $0x8] sm:$0xff] }
0x2585   :  { %v1935_v56 = vadd.f32 %v1934_v51, %v3713_v36 }
0x2587   :  { %3179 = vtanh.f32 %v1935_v56  ;;  %v2342_v57 = vmul.f32 -1.442695, %v1935_v56  ;;  %v2199_v56 = vld [vmem:[%s3888_s7 + $0x10] sm:$0xff] }
0x2589   :  { %3181 = vpow2.f32 %v2342_v57  ;;  %v2200_v57 = vld [vmem:[%s3888_s7 + $0x18] sm:$0xff] }
0x2591   :  { %v3180_v6 = vpop.eup %3179 }
0x2592   :  { %1945 = vrot.lane.b32.xlu0 %v3180_v6, %s3211_s21 }
0x2593   :  { %v3182_v10 = vpop.eup %3181 }
0x2594   :  { %v1939_v58 = vadd.f32 1.0, %v3182_v10  ;;  %v3061_v10 = vpack.c.bf16 %v2200_v57, %v2199_v56 }
0x2596   :  { %3183 = vrcp.f32 %v1939_v58  ;;  %v2201_v58 = vld [vmem:[%s3888_s7 + $0x20] sm:$0xff] }
0x25a0   :  { %v3184_v15 = vpop.eup %3183 }
0x25a1   :  { %v1943_v61 = vmul.f32 %v3184_v15, %v1839_v37  ;;  %v2079_v37 = vsel %vm94_vm6, %v2074_v34, %v2077_v35 }
0x2604   :  { %v1946_v59 = vpop.permute.xlu0 %1945 }
0x2605   :  { %v1948_v60 = vmul.f32 %v3184_v15, %v1946_v59 }
0x2607   :  { %1950 = vrot.lane.b32.xlu1 %v1948_v60, %s3212_s3 }
0x2679   :  { %v1951_v62 = vpop.permute.xlu1 %1950 }
0x267a   :  { %v1953_v63 = vadd.f32 %v1951_v62, %v1943_v61  ;;  %v2203_v61 = vld [vmem:[%s3888_s7 + $0x30] sm:$0xff]  ;;  %v2204_v62 = vld [vmem:[%s3888_s7 + $0x38] sm:$0xff] }
0x267c   :  { %3185 = vtanh.f32 %v1953_v63 }
0x2686   :  { %v3186_v0 = vpop.eup %3185 }
0x2687   :  { %1956 = vrot.lane.b32.xlu0 %v3186_v0, %s3211_s21 }
0x26f9   :  { %v1957_v2 = vpop.permute.xlu0 %1956 }
0x26fa   :  { %v1959_v5 = vmul.f32 %v3184_v15, %v1957_v2  ;;  %v2202_v15 = vld [vmem:[%s3888_s7 + $0x28] sm:$0xff] }
0x26fb   :  { %v3064_v60 = vpack.c.bf16 %v2202_v15, %v2201_v58 }
0x26fc   :  { %1970 = vrot.lane.b32.xlu0 %v1959_v5, %s3211_s21  ;;  %1967 = vrot.lane.b32.xlu1 %v1959_v5, %s3212_s3 }
0x276e   :  { %v1971_v7 = vpop.permute.xlu0 %1970  ;;  %v1968_v8 = vpop.permute.xlu1 %1967 }
0x276f   :  { %v1973_v9 = vsel %vm322_vm11, %v1968_v8, %v1971_v7 }
0x2770   :  { %v1974_v11 = vmul.f32 %v3377_v53, %v1973_v9  ;;  %v2347_v9 = vld [vmem:[%s3889_s8] ss:$0 sm:$0xff] }
0x2772   :  { %2785 = vmatmul.mubr.msk.f32.vlgmr.msra.gmra.mrb[16].mxu1 %vm205_vm7, %v1974_v11 }
0x2773   :  { %2822 = vmatprep.mubr.msk.f32.mxu1 %vm3209_vm0, %v3207_v3 }
0x2845   :  { %v2044_v17 = vpop.f32.mrb[16].mxu1 }
0x2846   :  { %v2048_v18 = vadd.f32 %v2044_v17, %v1965_v16  ;;  %v2786_v19 = vpop.f32.mrb[17].mxu1 }
0x2848   :  { %v2049_v20 = vadd.f32 %v2048_v18, %v3713_v36 }
0x284a   :  { %3187 = vtanh.f32 %v2049_v20  ;;  %v2344_v22 = vmul.f32 -1.442695, %v2049_v20 }
0x284c   :  { %3189 = vpow2.f32 %v2344_v22 }
0x2854   :  { %v3188_v21 = vpop.eup %3187 }
0x2855   :  { %2059 = vrot.lane.b32.xlu1 %v3188_v21, %s3211_s21 }
0x2856   :  { %v3190_v23 = vpop.eup %3189 }
0x2857   :  { %v2053_v24 = vadd.f32 1.0, %v3190_v23 }
0x2859   :  { %3191 = vrcp.f32 %v2053_v24 }
0x2863   :  { %v3192_v3 = vpop.eup %3191 }
0x2864   :  { %v2057_v26 = vmul.f32 %v3192_v3, %v1953_v63  ;;  %v3067_v63 = vpack.c.bf16 %v2204_v62, %v2203_v61 }
0x28c7   :  { %v2060_v33 = vpop.permute.xlu1 %2059 }
0x28c8   :  { %v2062_v25 = vmul.f32 %v3192_v3, %v2060_v33 }
0x28ca   :  { %2064 = vrot.lane.b32.xlu0 %v2062_v25, %s3212_s3 }
0x293c   :  { %v2065_v27 = vpop.permute.xlu0 %2064 }
0x293d   :  { %v2067_v28 = vadd.f32 %v2065_v27, %v2057_v26 }
0x293f   :  { %3193 = vtanh.f32 %v2067_v28 }
0x2949   :  { %v3194_v40 = vpop.eup %3193 }
0x294a   :  { %2070 = vrot.lane.b32.xlu1 %v3194_v40, %s3211_s21 }
0x29bc   :  { %v2071_v29 = vpop.permute.xlu1 %2070 }
0x29bd   :  { %v2073_v48 = vmul.f32 %v3192_v3, %v2071_v29 }
0x29bf   :  { %2084 = vrot.lane.b32.xlu1 %v2073_v48, %s3211_s21  ;;  %2081 = vrot.lane.b32.xlu0 %v2073_v48, %s3212_s3 }
0x2a31   :  { %v2085_v12 = vpop.permute.xlu1 %2084  ;;  %v2082_v30 = vpop.permute.xlu0 %2081 }
0x2a32   :  { %v2087_v52 = vsel %vm322_vm11, %v2082_v30, %v2085_v12 }
0x2a33   :  { %v2088_v31 = vmul.f32 %v3377_v53, %v2087_v52 }
0x2a35   :  { %2804 = vmatmul.mubr.msk.f32.vlgmr.msra.gmra.mrb[28].mxu0 %vm205_vm7, %v2088_v31 }
0x2b08   :  { %v2158_v38 = vpop.f32.mrb[28].mxu0 }
0x2b09   :  { %v2162_v39 = vadd.f32 %v2158_v38, %v2079_v37  ;;  %v2805_v41 = vpop.f32.mrb[29].mxu0 }
0x2b0b   :  { %v2163_v42 = vadd.f32 %v2162_v39, %v3713_v36  ;;  %v2197_v36 = vld [vmem:[%s3888_s7] sm:$0xff] }
0x2b0c   :  { %v3058_v6 = vpack.c.bf16 %v2198_v54, %v2197_v36 }
0x2b0d   :  { %3195 = vtanh.f32 %v2163_v42  ;;  %v2346_v44 = vmul.f32 -1.442695, %v2163_v42 }
0x2b0e   :  { %3059 = vmatpush3.bf16.msra.mxu1 %v3058_v6 }
0x2b0f   :  { %3197 = vpow2.f32 %v2346_v44  ;;  %3060 = vmatprep.subr.bf16.mxu1 %v3208_v4 }
0x2b12   :  { %3062 = vmatpush3.bf16.msra.mxu1 %v3061_v10 }
0x2b13   :  { %3063 = vmatprep.subr.bf16.mxu1 %v3208_v4 }
0x2b16   :  { %3065 = vmatpush3.bf16.msra.mxu1 %v3064_v60 }
0x2b17   :  { %v3196_v43 = vpop.eup %3195  ;;  %3066 = vmatprep.subr.bf16.mxu1 %v3208_v4 }
0x2b18   :  { %2173 = vrot.lane.b32.xlu0 %v3196_v43, %s3211_s21 }
0x2b19   :  { %v3198_v45 = vpop.eup %3197 }
0x2b1a   :  { %v2167_v53 = vadd.f32 1.0, %v3198_v45  ;;  %3068 = vmatpush3.bf16.msra.mxu1 %v3067_v63 }
0x2b1c   :  { %3199 = vrcp.f32 %v2167_v53 }
0x2b26   :  { %v3200_v46 = vpop.eup %3199 }
0x2b27   :  { %v2171_v1 = vmul.f32 %v3200_v46, %v2067_v28 }
0x2b8a   :  { %v2174_v47 = vpop.permute.xlu0 %2173 }
0x2b8b   :  { %v2176_v49 = vmul.f32 %v3200_v46, %v2174_v47 }
0x2b8d   :  { %2178 = vrot.lane.b32.xlu1 %v2176_v49, %s3212_s3 }
0x2bff   :  { %v2179_v50 = vpop.permute.xlu1 %2178 }
0x2c00   :  { %v2181_v51 = vadd.f32 %v2179_v50, %v2171_v1 }
0x2c02   :  { %3201 = vtanh.f32 %v2181_v51 }
0x2c0c   :  { %v3202_v59 = vpop.eup %3201 }
0x2c0d   :  { %2184 = vrot.lane.b32.xlu0 %v3202_v59, %s3211_s21 }
0x2c7f   :  { %v2185_v0 = vpop.permute.xlu0 %2184 }
0x2c80   :  { %v2187_v2 = vmul.f32 %v3200_v46, %v2185_v0 }
0x2c82   :  { %v2192_v5 = vrot.slane %v2187_v2, 4  ;;  %2189 = vrot.lane.b32.xlu1 %v2187_v2, %s3212_s3 }
0x2c84   :  { %2193 = vrot.lane.b32.xlu0 %v2192_v5, %s3211_s21 }
0x2cf4   :  { %v2190_v7 = vpop.permute.xlu1 %2189 }
0x2cf6   :  { %v2194_v8 = vpop.permute.xlu0 %2193 }
0x2cf7   :  { %v2196_v4 = vsel %vm322_vm11, %v2190_v7, %v2194_v8 }
0x2cf8   :  { %2823 = vmatmul.mubr.msk.f32.vlgmr.msra.gmra.mrb[18].mxu1 %vm205_vm7, %v2196_v4 }
0x2dcb   :  { %v2281_v11 = vpop.f32.mrb[18].mxu1 }
0x2dcc   :  { %v2282_v13 = vadd.f32 %v2347_v9, %v2281_v11  ;;  %v2824_v14 = vpop.f32.mrb[19].mxu1 }
0x2dce   :  { %v2286_v55 = vsel %vm2285_vm12, %v2282_v13, -inf }
0x2dcf   :  { %2287 = vmax.xlane.f32.xlu1 %v2286_v55 }
0x2e5c   :  { %v2288_v16 = vpop.xlane.xlu1 %2287 }
0x2e5d   :  { %v2289_v17 = vsub.f32 %v2282_v13, %v2288_v16 }
0x2e5f   :  { %v2290_v18 = vmul.f32 1.442695, %v2289_v17 }
0x2e61   :  { %3203 = vpow2.f32 %v2290_v18 }
0x2e6b   :  { %v3204_v19 = vpop.eup %3203 }
0x2e6c   :  { %v2292_v20 = vsel %vm2285_vm12, %v3204_v19, 0.0 }
0x2e6d   :  { %2293 = vadd.xlane.f32.xlu0 %v2292_v20 }
0x2efa   :  { %v2294_v21 = vpop.xlane.xlu0 %2293 }
0x2efb   :  { %3205 = vlog2.f32 %v2294_v21 }
0x2f05   :  { %v3206_v22 = vpop.eup %3205 }
0x2f06   :  { %v2296_v23 = vmul.f32 0.6931472, %v3206_v22 }
0x2f08   :  { %v2297_v24 = vadd.f32 %v2296_v23, %v2288_v16 }
0x2f0a   :  { %v2298_v3 = vsub.f32 %v2282_v13, %v2297_v24 }
0x2f0c   :  { %2299 = vst.msk [vmem:[%s3890_s9] sm:$0xf] %vm2285_vm12, %v2298_v3 }

</bundles_post_ra>
